<compile_context>
chip_gen: v5e
topology: v5e:2x2
jax: 0.10.0
libtpu: 0.0.40
codegen_flags: <defaults>
</compile_context>

<pallas_src>
import functools

import jax
import jax.numpy as jnp
from jax.experimental import pallas as pl
from jax.experimental.pallas import tpu as pltpu


# -----------------------------------------------------------------------------
# Kernel 1: per-phase 2x2-conv matmuls (bf16 MXU, f32 accum) + streaming stats
# -----------------------------------------------------------------------------
def conv_stats_kernel(p_ref, w_ref, y_ref, sum_ref, ssq_ref):
    # p_ref:   (1, 4, TS, Kd)  bf16  phase-decomposed patches for one spatial tile
    # w_ref:   (4, Kd, Cp)     bf16  per-phase weight matrices
    # y_ref:   (1, 4, TS, Cp)  f32   raw conv-transpose output tile
    # sum_ref: (1, 1, Cp)      f32   per-channel running sum   (resident across s axis)
    # ssq_ref: (1, 1, Cp)      f32   per-channel running sumsq (resident across s axis)
    @pl.when(pl.program_id(1) == 0)
    def _init():
        sum_ref[...] = jnp.zeros_like(sum_ref)
        ssq_ref[...] = jnp.zeros_like(ssq_ref)

    cp = sum_ref.shape[-1]
    acc_sum = jnp.zeros((1, cp), jnp.float32)
    acc_ssq = jnp.zeros((1, cp), jnp.float32)
    for ph in range(4):  # static unroll over the 4 parity phases
        y = jnp.dot(p_ref[0, ph], w_ref[ph],
                    preferred_element_type=jnp.float32)          # (TS, Cp) f32
        y_ref[0, ph] = y
        acc_sum = acc_sum + jnp.sum(y, axis=0, keepdims=True)
        acc_ssq = acc_ssq + jnp.sum(y * y, axis=0, keepdims=True)

    sum_ref[...] += acc_sum[None]
    ssq_ref[...] += acc_ssq[None]


# -----------------------------------------------------------------------------
# Kernel 2: InstanceNorm (from streamed stats) + ReLU.  Dropout = eval identity.
# -----------------------------------------------------------------------------
def norm_relu_kernel(y_ref, sum_ref, ssq_ref, o_ref, *, inv_count):
    mean = sum_ref[...] * inv_count                               # (1, 1, Cp) f32
    var = ssq_ref[...] * inv_count - mean * mean
    rstd = jax.lax.rsqrt(jnp.maximum(var, 0.0) + 1e-5)
    o_ref[...] = jnp.maximum((y_ref[...] - mean) * rstd, 0.0)


# -----------------------------------------------------------------------------
# Glue: sub-pixel decomposition of ConvTranspose2d(k=4, s=2, p=1).
# For output pixel (2*oy+ry, 2*ox+rx), contributions come from input rows
# ih = oy + ry + a - 1 (a in {0,1}) with kernel row kh = 3 - ry - 2a (same for cols).
# -----------------------------------------------------------------------------
def _build_phase_patches_and_weights(x, w_t):
    """x: (N,Cin,H,W), w_t: (Cin,Cout,4,4) ->
       patches (N, 4, H*W, Cin*4) bf16, weights (4, Cin*4, Cout) bf16."""
    N, Cin, H, W = x.shape
    Cout = w_t.shape[1]
    x_pad = jnp.pad(x.astype(jnp.bfloat16), ((0, 0), (0, 0), (1, 1), (1, 1)))
    w_b = w_t.astype(jnp.bfloat16)

    phase_patches, phase_weights = [], []
    for ry in range(2):
        for rx in range(2):
            taps, wtaps = [], []
            for a in range(2):
                for b in range(2):
                    taps.append(x_pad[:, :, ry + a:ry + a + H, rx + b:rx + b + W])
                    wtaps.append(w_b[:, :, 3 - ry - 2 * a, 3 - rx - 2 * b])
            p = jnp.stack(taps, axis=2)                       # (N, Cin, 4, H, W)
            p = jnp.transpose(p, (0, 3, 4, 1, 2))             # (N, H, W, Cin, 4)
            phase_patches.append(p.reshape(N, H * W, Cin * 4))
            wm = jnp.stack(wtaps, axis=1)                     # (Cin, 4, Cout)
            phase_weights.append(wm.reshape(Cin * 4, Cout))

    patches = jnp.stack(phase_patches, axis=1)                # (N, 4, S, Cin*4)
    weights = jnp.stack(phase_weights, axis=0)                # (4, Cin*4, Cout)
    return patches, weights


def _round_up(v, m):
    return ((v + m - 1) // m) * m


def _pick_tile(S, target):
    """Largest multiple-of-8 divisor of S that is <= target (or full S)."""
    if S % 8 != 0:
        return S
    best = 8
    for ts in range(8, min(target, S) + 1, 8):
        if S % ts == 0:
            best = ts
    return best


@functools.partial(jax.jit, static_argnames=("block_s",))
def upconv_forward(x, w_t, bias=None, *, block_s=512):
    """ConvTranspose2d(k=4,s=2,p=1) -> InstanceNorm2d -> Dropout(eval) -> ReLU.

    `bias` is accepted for API parity with nn.ConvTranspose2d but unused: a per-channel
    bias is exactly removed by InstanceNorm's mean subtraction (affine=False)."""
    del bias
    N, Cin, H, W = x.shape
    Cout = w_t.shape[1]
    S = H * W
    Kd = Cin * 4
    Kd_p = _round_up(Kd, 128)          # MXU-aligned contraction dim
    Cp = _round_up(Cout, 128)          # lane-dense / MXU-aligned channel dim
    TS = _pick_tile(S, block_s)        # spatial tile (shrink block_s for v7x VMEM)
    n_s = S // TS

    patches, weights = _build_phase_patches_and_weights(x, w_t)
    patches = jnp.pad(patches, ((0, 0), (0, 0), (0, 0), (0, Kd_p - Kd)))
    weights = jnp.pad(weights, ((0, 0), (0, Kd_p - Kd), (0, Cp - Cout)))

    y, ssum, ssq = pl.pallas_call(
        conv_stats_kernel,
        out_shape=(
            jax.ShapeDtypeStruct((N, 4, S, Cp), jnp.float32),
            jax.ShapeDtypeStruct((N, 1, Cp), jnp.float32),
            jax.ShapeDtypeStruct((N, 1, Cp), jnp.float32),
        ),
        grid_spec=pltpu.PrefetchScalarGridSpec(
            num_scalar_prefetch=0,
            grid=(N, n_s),
            in_specs=[
                pl.BlockSpec((1, 4, TS, Kd_p), lambda n, s: (n, 0, s, 0)),
                pl.BlockSpec((4, Kd_p, Cp), lambda n, s: (0, 0, 0)),
            ],
            out_specs=[
                pl.BlockSpec((1, 4, TS, Cp), lambda n, s: (n, 0, s, 0)),
                pl.BlockSpec((1, 1, Cp), lambda n, s: (n, 0, 0)),
                pl.BlockSpec((1, 1, Cp), lambda n, s: (n, 0, 0)),
            ],
        ),
        compiler_params=pltpu.CompilerParams(
            dimension_semantics=("parallel", "arbitrary")),
    )(patches, weights)

    out = pl.pallas_call(
        functools.partial(norm_relu_kernel, inv_count=1.0 / float(4 * S)),
        out_shape=jax.ShapeDtypeStruct((N, 4, S, Cp), jnp.float32),
        grid_spec=pltpu.PrefetchScalarGridSpec(
            num_scalar_prefetch=0,
            grid=(N, n_s),
            in_specs=[
                pl.BlockSpec((1, 4, TS, Cp), lambda n, s: (n, 0, s, 0)),
                pl.BlockSpec((1, 1, Cp), lambda n, s: (n, 0, 0)),
                pl.BlockSpec((1, 1, Cp), lambda n, s: (n, 0, 0)),
            ],
            out_specs=pl.BlockSpec((1, 4, TS, Cp), lambda n, s: (n, 0, s, 0)),
        ),
        compiler_params=pltpu.CompilerParams(
            dimension_semantics=("parallel", "parallel")),
    )(y, ssum, ssq)

    # (N, 4, S, Cp) -> NCHW: phase (ry, rx) at (oy, ox) -> output (2*oy+ry, 2*ox+rx).
    out = out[..., :Cout].reshape(N, 2, 2, H, W, Cout)
    out = jnp.transpose(out, (0, 5, 3, 1, 4, 2))              # (N, C, H, 2, W, 2)
    return out.reshape(N, Cout, 2 * H, 2 * W)


# -----------------------------------------------------------------------------
# Pure-JAX reference (silent correctness check)
# -----------------------------------------------------------------------------
def reference(x, w_t, bias, K=4, stride=2, padding=1):
    w_conv = jnp.transpose(w_t[:, :, ::-1, ::-1], (1, 0, 2, 3))   # (Cout, Cin, K, K)
    pad = K - 1 - padding
    y = jax.lax.conv_general_dilated(
        x, w_conv, window_strides=(1, 1),
        padding=[(pad, pad), (pad, pad)],
        lhs_dilation=(stride, stride),
        dimension_numbers=("NCHW", "OIHW", "NCHW"),
        precision=jax.lax.Precision.HIGHEST)
    y = y + bias[None, :, None, None]
    mean = y.mean(axis=(2, 3), keepdims=True)
    var = ((y - mean) ** 2).mean(axis=(2, 3), keepdims=True)
    y = (y - mean) / jnp.sqrt(var + 1e-5)
    return jnp.maximum(y, 0.0)


if __name__ == "__main__":
    N, Cin, Cout, H, W = 2, 4, 8, 16, 16
    K = 4

    key = jax.random.PRNGKey(0)
    kx, kw, kb = jax.random.split(key, 3)
    x = jax.random.normal(kx, (N, Cin, H, W), jnp.float32)
    bound = 1.0 / jnp.sqrt(Cin * K * K)
    # PyTorch ConvTranspose2d weight: (in_channels, out_channels, K, K); bias: (out_channels,)
    w_t = jax.random.uniform(kw, (Cin, Cout, K, K), jnp.float32, -bound, bound)
    bias = jax.random.uniform(kb, (Cout,), jnp.float32, -bound, bound)

    # block_s=128 -> 2 spatial tiles per sample: exercises the streaming-stats path.
    out = upconv_forward(x, w_t, bias, block_s=128)
    out = jax.block_until_ready(out)
    assert out.shape == (N, Cout, 2 * H, 2 * W), out.shape

    # Reference on bf16-rounded inputs (the kernel's matmul runs bf16 on the MXU with f32
    # accumulation).  The reference *includes* the bias the kernel deliberately drops —
    # InstanceNorm cancels it exactly, so results must still match.
    x_r = x.astype(jnp.bfloat16).astype(jnp.float32)
    w_r = w_t.astype(jnp.bfloat16).astype(jnp.float32)
    ref = reference(x_r, w_r, bias)
    max_err = float(jnp.max(jnp.abs(out - ref)))
    assert jnp.allclose(out, ref, atol=2e-3, rtol=2e-3), max_err

    print("KERNEL_OK")
</pallas_src>

<mosaic_0001>
module attributes {stable_mosaic.version = 11 : i64} {
  func.func @conv_stats_kernel(%arg0: i32, %arg1: i32, %arg2: memref<1x4x128x128xbf16, #tpu.memory_space<vmem>>, %arg3: memref<4x128x128xbf16, #tpu.memory_space<vmem>>, %arg4: memref<1x4x128x128xf32, #tpu.memory_space<vmem>>, %arg5: memref<1x1x128xf32, #tpu.memory_space<vmem>>, %arg6: memref<1x1x128xf32, #tpu.memory_space<vmem>>) attributes {dimension_semantics = [#tpu.dimension_semantics<parallel>, #tpu.dimension_semantics<arbitrary>], iteration_bounds = array<i64: 2, 2>, scalar_prefetch = 0 : i64, scratch_operands = 0 : i64, tpu.core_type = #tpu.core_type<tc>, window_params = [{transform_indices = @transform_0, window_bounds = array<i64: 1, 4, 128, 128>}, {pipeline_mode = #tpu.pipeline_mode<synchronous>, transform_indices = @transform_1, window_bounds = array<i64: 4, 128, 128>}, {transform_indices = @transform_2, window_bounds = array<i64: 1, 4, 128, 128>}, {transform_indices = @transform_3, window_bounds = array<i64: 1, 1, 128>}, {transform_indices = @transform_4, window_bounds = array<i64: 1, 1, 128>}]} {
    %c0_i32 = arith.constant 0 : i32
    %0 = arith.cmpi eq, %arg1, %c0_i32 : i32
    %1 = arith.extui %0 : i1 to i32
    %c0_i32_0 = arith.constant 0 : i32
    %2 = arith.cmpi ne, %1, %c0_i32_0 : i32
    scf.if %2 {
      %cst_66 = arith.constant 0.000000e+00 : f32
      %73 = vector.broadcast %cst_66 : f32 to vector<1x1x128xf32>
      %c0_67 = arith.constant 0 : index
      %c0_68 = arith.constant 0 : index
      %c0_69 = arith.constant 0 : index
      %74 = vector.load %arg5[%c0_67, %c0_68, %c0_69] : memref<1x1x128xf32, #tpu.memory_space<vmem>>, vector<1x1x128xf32>
      tpu.vector_store %arg5[%c0_67, %c0_68, %c0_69], %73 {strides = array<i32>} : memref<1x1x128xf32, #tpu.memory_space<vmem>>, vector<1x1x128xf32>,
      %cst_70 = arith.constant 0.000000e+00 : f32
      %75 = vector.broadcast %cst_70 : f32 to vector<1x1x128xf32>
      %c0_71 = arith.constant 0 : index
      %c0_72 = arith.constant 0 : index
      %c0_73 = arith.constant 0 : index
      %76 = vector.load %arg6[%c0_71, %c0_72, %c0_73] : memref<1x1x128xf32, #tpu.memory_space<vmem>>, vector<1x1x128xf32>
      tpu.vector_store %arg6[%c0_71, %c0_72, %c0_73], %75 {strides = array<i32>} : memref<1x1x128xf32, #tpu.memory_space<vmem>>, vector<1x1x128xf32>,
    } else {
    }
    %cst = arith.constant 0.000000e+00 : f32
    %3 = vector.broadcast %cst : f32 to vector<1x128xf32>
    %cst_1 = arith.constant 0.000000e+00 : f32
    %4 = vector.broadcast %cst_1 : f32 to vector<1x128xf32>
    %c0 = arith.constant 0 : index
    %c0_2 = arith.constant 0 : index
    %c0_3 = arith.constant 0 : index
    %c0_4 = arith.constant 0 : index
    %5 = vector.load %arg2[%c0, %c0_2, %c0_3, %c0_4] : memref<1x4x128x128xbf16, #tpu.memory_space<vmem>>, vector<1x1x128x128xbf16>
    %6 = vector.shape_cast %5 : vector<1x1x128x128xbf16> to vector<128x128xbf16>
    %c0_5 = arith.constant 0 : index
    %c0_6 = arith.constant 0 : index
    %c0_7 = arith.constant 0 : index
    %7 = vector.load %arg3[%c0_5, %c0_6, %c0_7] : memref<4x128x128xbf16, #tpu.memory_space<vmem>>, vector<1x128x128xbf16>
    %8 = vector.shape_cast %7 : vector<1x128x128xbf16> to vector<128x128xbf16>
    %cst_8 = arith.constant dense<0.000000e+00> : vector<128x128xf32>
    %9 = tpu.matmul %6, %8, %cst_8 {dimension_numbers = #tpu.dot_dimension_numbers<[1], [0], [0], [1], [0, 0, 1, 1], [], []>} : vector<128x128xbf16>, vector<128x128xbf16>, vector<128x128xf32> -> vector<128x128xf32>
    %c0_9 = arith.constant 0 : index
    %c0_10 = arith.constant 0 : index
    %c0_11 = arith.constant 0 : index
    %c0_12 = arith.constant 0 : index
    %10 = vector.load %arg4[%c0_9, %c0_10, %c0_11, %c0_12] : memref<1x4x128x128xf32, #tpu.memory_space<vmem>>, vector<1x1x128x128xf32>
    %11 = vector.shape_cast %10 : vector<1x1x128x128xf32> to vector<128x128xf32>
    %12 = vector.shape_cast %9 : vector<128x128xf32> to vector<1x1x128x128xf32>
    tpu.vector_store %arg4[%c0_9, %c0_10, %c0_11, %c0_12], %12 {strides = array<i32>} : memref<1x4x128x128xf32, #tpu.memory_space<vmem>>, vector<1x1x128x128xf32>,
    %cst_13 = arith.constant dense<0.000000e+00> : vector<128xf32>
    %13 = vector.multi_reduction <add>, %9, %cst_13 [0] : vector<128x128xf32> to vector<128xf32>
    %14 = vector.shape_cast %13 : vector<128xf32> to vector<1x128xf32>
    %15 = arith.addf %3, %14 : vector<1x128xf32>
    %16 = arith.mulf %9, %9 : vector<128x128xf32>
    %cst_14 = arith.constant dense<0.000000e+00> : vector<128xf32>
    %17 = vector.multi_reduction <add>, %16, %cst_14 [0] : vector<128x128xf32> to vector<128xf32>
    %18 = vector.shape_cast %17 : vector<128xf32> to vector<1x128xf32>
    %19 = arith.addf %4, %18 : vector<1x128xf32>
    %c0_15 = arith.constant 0 : index
    %c1 = arith.constant 1 : index
    %c0_16 = arith.constant 0 : index
    %c0_17 = arith.constant 0 : index
    %20 = vector.load %arg2[%c0_15, %c1, %c0_16, %c0_17] : memref<1x4x128x128xbf16, #tpu.memory_space<vmem>>, vector<1x1x128x128xbf16>
    %21 = vector.shape_cast %20 : vector<1x1x128x128xbf16> to vector<128x128xbf16>
    %c1_18 = arith.constant 1 : index
    %c0_19 = arith.constant 0 : index
    %c0_20 = arith.constant 0 : index
    %22 = vector.load %arg3[%c1_18, %c0_19, %c0_20] : memref<4x128x128xbf16, #tpu.memory_space<vmem>>, vector<1x128x128xbf16>
    %23 = vector.shape_cast %22 : vector<1x128x128xbf16> to vector<128x128xbf16>
    %cst_21 = arith.constant dense<0.000000e+00> : vector<128x128xf32>
    %24 = tpu.matmul %21, %23, %cst_21 {dimension_numbers = #tpu.dot_dimension_numbers<[1], [0], [0], [1], [0, 0, 1, 1], [], []>} : vector<128x128xbf16>, vector<128x128xbf16>, vector<128x128xf32> -> vector<128x128xf32>
    %c0_22 = arith.constant 0 : index
    %c1_23 = arith.constant 1 : index
    %c0_24 = arith.constant 0 : index
    %c0_25 = arith.constant 0 : index
    %25 = vector.load %arg4[%c0_22, %c1_23, %c0_24, %c0_25] : memref<1x4x128x128xf32, #tpu.memory_space<vmem>>, vector<1x1x128x128xf32>
    %26 = vector.shape_cast %25 : vector<1x1x128x128xf32> to vector<128x128xf32>
    %27 = vector.shape_cast %24 : vector<128x128xf32> to vector<1x1x128x128xf32>
    tpu.vector_store %arg4[%c0_22, %c1_23, %c0_24, %c0_25], %27 {strides = array<i32>} : memref<1x4x128x128xf32, #tpu.memory_space<vmem>>, vector<1x1x128x128xf32>,
    %cst_26 = arith.constant dense<0.000000e+00> : vector<128xf32>
    %28 = vector.multi_reduction <add>, %24, %cst_26 [0] : vector<128x128xf32> to vector<128xf32>
    %29 = vector.shape_cast %28 : vector<128xf32> to vector<1x128xf32>
    %30 = arith.addf %15, %29 : vector<1x128xf32>
    %31 = arith.mulf %24, %24 : vector<128x128xf32>
    %cst_27 = arith.constant dense<0.000000e+00> : vector<128xf32>
    %32 = vector.multi_reduction <add>, %31, %cst_27 [0] : vector<128x128xf32> to vector<128xf32>
    %33 = vector.shape_cast %32 : vector<128xf32> to vector<1x128xf32>
    %34 = arith.addf %19, %33 : vector<1x128xf32>
    %c0_28 = arith.constant 0 : index
    %c2 = arith.constant 2 : index
    %c0_29 = arith.constant 0 : index
    %c0_30 = arith.constant 0 : index
    %35 = vector.load %arg2[%c0_28, %c2, %c0_29, %c0_30] : memref<1x4x128x128xbf16, #tpu.memory_space<vmem>>, vector<1x1x128x128xbf16>
    %36 = vector.shape_cast %35 : vector<1x1x128x128xbf16> to vector<128x128xbf16>
    %c2_31 = arith.constant 2 : index
    %c0_32 = arith.constant 0 : index
    %c0_33 = arith.constant 0 : index
    %37 = vector.load %arg3[%c2_31, %c0_32, %c0_33] : memref<4x128x128xbf16, #tpu.memory_space<vmem>>, vector<1x128x128xbf16>
    %38 = vector.shape_cast %37 : vector<1x128x128xbf16> to vector<128x128xbf16>
    %cst_34 = arith.constant dense<0.000000e+00> : vector<128x128xf32>
    %39 = tpu.matmul %36, %38, %cst_34 {dimension_numbers = #tpu.dot_dimension_numbers<[1], [0], [0], [1], [0, 0, 1, 1], [], []>} : vector<128x128xbf16>, vector<128x128xbf16>, vector<128x128xf32> -> vector<128x128xf32>
    %c0_35 = arith.constant 0 : index
    %c2_36 = arith.constant 2 : index
    %c0_37 = arith.constant 0 : index
    %c0_38 = arith.constant 0 : index
    %40 = vector.load %arg4[%c0_35, %c2_36, %c0_37, %c0_38] : memref<1x4x128x128xf32, #tpu.memory_space<vmem>>, vector<1x1x128x128xf32>
    %41 = vector.shape_cast %40 : vector<1x1x128x128xf32> to vector<128x128xf32>
    %42 = vector.shape_cast %39 : vector<128x128xf32> to vector<1x1x128x128xf32>
    tpu.vector_store %arg4[%c0_35, %c2_36, %c0_37, %c0_38], %42 {strides = array<i32>} : memref<1x4x128x128xf32, #tpu.memory_space<vmem>>, vector<1x1x128x128xf32>,
    %cst_39 = arith.constant dense<0.000000e+00> : vector<128xf32>
    %43 = vector.multi_reduction <add>, %39, %cst_39 [0] : vector<128x128xf32> to vector<128xf32>
    %44 = vector.shape_cast %43 : vector<128xf32> to vector<1x128xf32>
    %45 = arith.addf %30, %44 : vector<1x128xf32>
    %46 = arith.mulf %39, %39 : vector<128x128xf32>
    %cst_40 = arith.constant dense<0.000000e+00> : vector<128xf32>
    %47 = vector.multi_reduction <add>, %46, %cst_40 [0] : vector<128x128xf32> to vector<128xf32>
    %48 = vector.shape_cast %47 : vector<128xf32> to vector<1x128xf32>
    %49 = arith.addf %34, %48 : vector<1x128xf32>
    %c0_41 = arith.constant 0 : index
    %c3 = arith.constant 3 : index
    %c0_42 = arith.constant 0 : index
    %c0_43 = arith.constant 0 : index
    %50 = vector.load %arg2[%c0_41, %c3, %c0_42, %c0_43] : memref<1x4x128x128xbf16, #tpu.memory_space<vmem>>, vector<1x1x128x128xbf16>
    %51 = vector.shape_cast %50 : vector<1x1x128x128xbf16> to vector<128x128xbf16>
    %c3_44 = arith.constant 3 : index
    %c0_45 = arith.constant 0 : index
    %c0_46 = arith.constant 0 : index
    %52 = vector.load %arg3[%c3_44, %c0_45, %c0_46] : memref<4x128x128xbf16, #tpu.memory_space<vmem>>, vector<1x128x128xbf16>
    %53 = vector.shape_cast %52 : vector<1x128x128xbf16> to vector<128x128xbf16>
    %cst_47 = arith.constant dense<0.000000e+00> : vector<128x128xf32>
    %54 = tpu.matmul %51, %53, %cst_47 {dimension_numbers = #tpu.dot_dimension_numbers<[1], [0], [0], [1], [0, 0, 1, 1], [], []>} : vector<128x128xbf16>, vector<128x128xbf16>, vector<128x128xf32> -> vector<128x128xf32>
    %c0_48 = arith.constant 0 : index
    %c3_49 = arith.constant 3 : index
    %c0_50 = arith.constant 0 : index
    %c0_51 = arith.constant 0 : index
    %55 = vector.load %arg4[%c0_48, %c3_49, %c0_50, %c0_51] : memref<1x4x128x128xf32, #tpu.memory_space<vmem>>, vector<1x1x128x128xf32>
    %56 = vector.shape_cast %55 : vector<1x1x128x128xf32> to vector<128x128xf32>
    %57 = vector.shape_cast %54 : vector<128x128xf32> to vector<1x1x128x128xf32>
    tpu.vector_store %arg4[%c0_48, %c3_49, %c0_50, %c0_51], %57 {strides = array<i32>} : memref<1x4x128x128xf32, #tpu.memory_space<vmem>>, vector<1x1x128x128xf32>,
    %cst_52 = arith.constant dense<0.000000e+00> : vector<128xf32>
    %58 = vector.multi_reduction <add>, %54, %cst_52 [0] : vector<128x128xf32> to vector<128xf32>
    %59 = vector.shape_cast %58 : vector<128xf32> to vector<1x128xf32>
    %60 = arith.addf %45, %59 : vector<1x128xf32>
    %61 = arith.mulf %54, %54 : vector<128x128xf32>
    %cst_53 = arith.constant dense<0.000000e+00> : vector<128xf32>
    %62 = vector.multi_reduction <add>, %61, %cst_53 [0] : vector<128x128xf32> to vector<128xf32>
    %63 = vector.shape_cast %62 : vector<128xf32> to vector<1x128xf32>
    %64 = arith.addf %49, %63 : vector<1x128xf32>
    %c0_54 = arith.constant 0 : index
    %c0_55 = arith.constant 0 : index
    %c0_56 = arith.constant 0 : index
    %65 = vector.load %arg5[%c0_54, %c0_55, %c0_56] : memref<1x1x128xf32, #tpu.memory_space<vmem>>, vector<1x1x128xf32>
    %66 = vector.shape_cast %60 : vector<1x128xf32> to vector<1x1x128xf32>
    %67 = arith.addf %65, %66 : vector<1x1x128xf32>
    %c0_57 = arith.constant 0 : index
    %c0_58 = arith.constant 0 : index
    %c0_59 = arith.constant 0 : index
    %68 = vector.load %arg5[%c0_57, %c0_58, %c0_59] : memref<1x1x128xf32, #tpu.memory_space<vmem>>, vector<1x1x128xf32>
    tpu.vector_store %arg5[%c0_57, %c0_58, %c0_59], %67 {strides = array<i32>} : memref<1x1x128xf32, #tpu.memory_space<vmem>>, vector<1x1x128xf32>,
    %c0_60 = arith.constant 0 : index
    %c0_61 = arith.constant 0 : index
    %c0_62 = arith.constant 0 : index
    %69 = vector.load %arg6[%c0_60, %c0_61, %c0_62] : memref<1x1x128xf32, #tpu.memory_space<vmem>>, vector<1x1x128xf32>
    %70 = vector.shape_cast %64 : vector<1x128xf32> to vector<1x1x128xf32>
    %71 = arith.addf %69, %70 : vector<1x1x128xf32>
    %c0_63 = arith.constant 0 : index
    %c0_64 = arith.constant 0 : index
    %c0_65 = arith.constant 0 : index
    %72 = vector.load %arg6[%c0_63, %c0_64, %c0_65] : memref<1x1x128xf32, #tpu.memory_space<vmem>>, vector<1x1x128xf32>
    tpu.vector_store %arg6[%c0_63, %c0_64, %c0_65], %71 {strides = array<i32>} : memref<1x1x128xf32, #tpu.memory_space<vmem>>, vector<1x1x128xf32>,
    return
  }
  func.func @transform_0(%arg0: i32, %arg1: i32) -> (i32, i32, i32, i32) {
    %c0_i32 = arith.constant 0 : i32
    %c0_i32_0 = arith.constant 0 : i32
    %c0_i32_1 = arith.constant 0 : i32
    return %arg0, %c0_i32, %arg1, %c0_i32_0 : i32, i32, i32, i32
  }
  func.func @transform_1(%arg0: i32, %arg1: i32) -> (i32, i32, i32) {
    %c0_i32 = arith.constant 0 : i32
    %c0_i32_0 = arith.constant 0 : i32
    %c0_i32_1 = arith.constant 0 : i32
    %c0_i32_2 = arith.constant 0 : i32
    return %c0_i32, %c0_i32_0, %c0_i32_1 : i32, i32, i32
  }
  func.func @transform_2(%arg0: i32, %arg1: i32) -> (i32, i32, i32, i32) {
    %c0_i32 = arith.constant 0 : i32
    %c0_i32_0 = arith.constant 0 : i32
    %c0_i32_1 = arith.constant 0 : i32
    return %arg0, %c0_i32, %arg1, %c0_i32_0 : i32, i32, i32, i32
  }
  func.func @transform_3(%arg0: i32, %arg1: i32) -> (i32, i32, i32) {
    %c0_i32 = arith.constant 0 : i32
    %c0_i32_0 = arith.constant 0 : i32
    %c0_i32_1 = arith.constant 0 : i32
    return %arg0, %c0_i32, %c0_i32_0 : i32, i32, i32
  }
  func.func @transform_4(%arg0: i32, %arg1: i32) -> (i32, i32, i32) {
    %c0_i32 = arith.constant 0 : i32
    %c0_i32_0 = arith.constant 0 : i32
    %c0_i32_1 = arith.constant 0 : i32
    return %arg0, %c0_i32, %c0_i32_0 : i32, i32, i32
  }
}

module attributes {stable_mosaic.version = 11 : i64} {
  func.func @norm_relu_kernel(%arg0: i32, %arg1: i32, %arg2: memref<1x4x128x128xf32, #tpu.memory_space<vmem>>, %arg3: memref<1x1x128xf32, #tpu.memory_space<vmem>>, %arg4: memref<1x1x128xf32, #tpu.memory_space<vmem>>, %arg5: memref<1x4x128x128xf32, #tpu.memory_space<vmem>>) attributes {dimension_semantics = [#tpu.dimension_semantics<parallel>, #tpu.dimension_semantics<parallel>], iteration_bounds = array<i64: 2, 2>, scalar_prefetch = 0 : i64, scratch_operands = 0 : i64, tpu.core_type = #tpu.core_type<tc>, window_params = [{transform_indices = @transform_0, window_bounds = array<i64: 1, 4, 128, 128>}, {transform_indices = @transform_1, window_bounds = array<i64: 1, 1, 128>}, {transform_indices = @transform_2, window_bounds = array<i64: 1, 1, 128>}, {transform_indices = @transform_3, window_bounds = array<i64: 1, 4, 128, 128>}]} {
    %c0 = arith.constant 0 : index
    %c0_0 = arith.constant 0 : index
    %c0_1 = arith.constant 0 : index
    %0 = vector.load %arg3[%c0, %c0_0, %c0_1] : memref<1x1x128xf32, #tpu.memory_space<vmem>>, vector<1x1x128xf32>
    %cst = arith.constant 9.765625E-4 : f32
    %1 = vector.broadcast %cst : f32 to vector<1x1x128xf32>
    %2 = arith.mulf %0, %1 : vector<1x1x128xf32>
    %c0_2 = arith.constant 0 : index
    %c0_3 = arith.constant 0 : index
    %c0_4 = arith.constant 0 : index
    %3 = vector.load %arg4[%c0_2, %c0_3, %c0_4] : memref<1x1x128xf32, #tpu.memory_space<vmem>>, vector<1x1x128xf32>
    %cst_5 = arith.constant 9.765625E-4 : f32
    %4 = vector.broadcast %cst_5 : f32 to vector<1x1x128xf32>
    %5 = arith.mulf %3, %4 : vector<1x1x128xf32>
    %6 = arith.mulf %2, %2 : vector<1x1x128xf32>
    %7 = arith.subf %5, %6 : vector<1x1x128xf32>
    %cst_6 = arith.constant 0.000000e+00 : f32
    %8 = vector.broadcast %cst_6 : f32 to vector<1x1x128xf32>
    %9 = arith.maximumf %7, %8 : vector<1x1x128xf32>
    %cst_7 = arith.constant 9.99999974E-6 : f32
    %10 = vector.broadcast %cst_7 : f32 to vector<1x1x128xf32>
    %11 = arith.addf %9, %10 : vector<1x1x128xf32>
    %12 = math.rsqrt %11 : vector<1x1x128xf32>
    %c0_8 = arith.constant 0 : index
    %c0_9 = arith.constant 0 : index
    %c0_10 = arith.constant 0 : index
    %c0_11 = arith.constant 0 : index
    %13 = vector.load %arg2[%c0_8, %c0_9, %c0_10, %c0_11] : memref<1x4x128x128xf32, #tpu.memory_space<vmem>>, vector<1x4x128x128xf32>
    %14 = vector.shape_cast %2 : vector<1x1x128xf32> to vector<1x1x1x128xf32>
    %15 = vector.broadcast %14 : vector<1x1x1x128xf32> to vector<1x4x128x128xf32>
    %16 = arith.subf %13, %15 : vector<1x4x128x128xf32>
    %17 = vector.shape_cast %12 : vector<1x1x128xf32> to vector<1x1x1x128xf32>
    %18 = vector.broadcast %17 : vector<1x1x1x128xf32> to vector<1x4x128x128xf32>
    %19 = arith.mulf %16, %18 : vector<1x4x128x128xf32>
    %cst_12 = arith.constant 0.000000e+00 : f32
    %20 = vector.broadcast %cst_12 : f32 to vector<1x4x128x128xf32>
    %21 = arith.maximumf %19, %20 : vector<1x4x128x128xf32>
    %c0_13 = arith.constant 0 : index
    %c0_14 = arith.constant 0 : index
    %c0_15 = arith.constant 0 : index
    %c0_16 = arith.constant 0 : index
    %22 = vector.load %arg5[%c0_13, %c0_14, %c0_15, %c0_16] : memref<1x4x128x128xf32, #tpu.memory_space<vmem>>, vector<1x4x128x128xf32>
    tpu.vector_store %arg5[%c0_13, %c0_14, %c0_15, %c0_16], %21 {strides = array<i32>} : memref<1x4x128x128xf32, #tpu.memory_space<vmem>>, vector<1x4x128x128xf32>,
    return
  }
  func.func @transform_0(%arg0: i32, %arg1: i32) -> (i32, i32, i32, i32) {
    %c0_i32 = arith.constant 0 : i32
    %c0_i32_0 = arith.constant 0 : i32
    %c0_i32_1 = arith.constant 0 : i32
    return %arg0, %c0_i32, %arg1, %c0_i32_0 : i32, i32, i32, i32
  }
  func.func @transform_1(%arg0: i32, %arg1: i32) -> (i32, i32, i32) {
    %c0_i32 = arith.constant 0 : i32
    %c0_i32_0 = arith.constant 0 : i32
    %c0_i32_1 = arith.constant 0 : i32
    return %arg0, %c0_i32, %c0_i32_0 : i32, i32, i32
  }
  func.func @transform_2(%arg0: i32, %arg1: i32) -> (i32, i32, i32) {
    %c0_i32 = arith.constant 0 : i32
    %c0_i32_0 = arith.constant 0 : i32
    %c0_i32_1 = arith.constant 0 : i32
    return %arg0, %c0_i32, %c0_i32_0 : i32, i32, i32
  }
  func.func @transform_3(%arg0: i32, %arg1: i32) -> (i32, i32, i32, i32) {
    %c0_i32 = arith.constant 0 : i32
    %c0_i32_0 = arith.constant 0 : i32
    %c0_i32_1 = arith.constant 0 : i32
    return %arg0, %c0_i32, %arg1, %c0_i32_0 : i32, i32, i32, i32
  }
}

</mosaic_0001>

<bundles_post_ra>
// kernel: upconv_forward.3
= control target key start
LH: loop header
LB: loop body
LE: loop exit
PB: predicated region body
PF: predicated region fallthrough
CT: control target
= control target key end

     0   :  { %s1385_s12 = smov 0   ;;  %s1387_s13 = smov 0   ;;  %s2022_s0 = inlined_call_operand.vmem [shape: f32[2,4,256,128], index: 0, kind: input, shape index: {}]   ;;  %s2023_s1 = inlined_call_operand.vmem [shape: f32[2,1,128], index: 1, kind: input, shape index: {}]   ;;  %s2024_s2 = inlined_call_operand.vmem [shape: f32[2,1,128], index: 2, kind: input, shape index: {}]   ;;  %s2025_s3 = inlined_call_operand.vmem [shape: f32[2,4,256,128], index: 3, kind: output, shape index: {}]  }
   0x1   :  { %s1389_s14 = smov 0   ;;  %s1391_s15 = smov 0  }
   0x2   :  { %s1393_s16 = smov 0   ;;  %s1395_s17 = smov 0  }
   0x3   :  { %s1397_s18 = smov 0  }
   0x4 LB: > { %s22_s19 = sadd.s32 1, %s1355_s16  ;;  %s25_s20 = sadd.s32 1, %s1359_s17  ;;  %s1363_s18 = sphi %s1397_s18, %s13_s18   ;;  %s1359_s17 = sphi %s1395_s17, %s2032_s17   ;;  %s1355_s16 = sphi %s1393_s16, %s2031_s16   ;;  %s1351_s15 = sphi %s1391_s15, %s2030_s15   ;;  %s1347_s14 = sphi %s1389_s14, %s2029_s14   ;;  %s1343_s13 = sphi %s1387_s13, %s2028_s13   ;;  %s1339_s12 = sphi %s1385_s12, %s2027_s12  }
   0x5   : > { %p23_p0 = scmp.ge.s32.totalorder %s22_s19, 2  ;;  %s1234_s21 = sadd.s32 4294967295, %s1363_s18  }
   0x6   : > { %p41_p1 = scmp.ne.s32.totalorder %s1343_s13, %s1339_s12  ;;  %p42_p2 = scmp.eq.s32.totalorder %s1363_s18, 0 }
   0x7   : > { %s2034_s19 = smov (%p23_p0, %s22_s19), 0  ;;  %s2036_s20 = smov (!%p23_p0, %s25_s20), %s1359_s17 }
   0x8   : > { %p27_p3 = scmp.ge.s32.totalorder %s2036_s20, 2  ;;  %p125_p4 = scmp.eq.s32.totalorder %s1234_s21, 3 }
   0x9   : > { %s30_s22 = ssub.s32 %s1355_s16, %s2034_s19  ;;  %p43_p5 = por %p42_p2, %p41_p1 }
   0xa   : > { %s2038_s20 = smov (%p27_p3, %s2036_s20), 0  ;;  %p1433_p6 = por %p125_p4, %p41_p1 }
   0xb   : > { %s29_s24 = ssub.s32 %s1359_s17, %s2038_s20  ;;  %s34_s26 = sadd.s32 1, %s1343_s13 }
   0xc   : > { %s31_s25 = sor.u32 %s30_s22, %s29_s24  ;;  %p1237_p8 = scmp.ge.s32.totalorder %s1363_s18, 4 }
   0xd   : > { %p32_p7 = scmp.eq.s32.totalorder %s31_s25, 0 }
   0xe   : > { %147 = sbr.rel (%p1237_p8) target bundleno = 90 (0x5a), region = 16 }
   0xf   : > { %s1441_s27 = scalar_select %p32_p7, %s1343_s13, %s34_s26  }
  0x13   : > { %150 = sbr.rel (!%p43_p5) target bundleno = 90 (0x5a), region = 20  ;;  %s152_s28 = sand.u32 (%p43_p5), 1, %s1343_s13  }
  0x14   : > { %s1239_s29 = sshll.u32 (%p43_p5), %s1355_s16, 4  ;;  %s1238_s30 = sshll.u32 (%p43_p5), %s152_s28, 9 }
  0x15   : > { %s1240_s4 = sshll.u32 (%p43_p5), %s1359_s17, 7  ;;  %s1455_s10 = scalar_lea.vmem (%p43_p5), [#allocation2], %s1238_s30 }
  0x16   : > { %s157_s5 = sadd.s32 (%p43_p5), %s1240_s4, %s1239_s29 }
  0x17   : > { %s1241_s6 = sshll.u32 (%p43_p5), %s157_s5, 3 }
  0x18   : > { %s1450_s9 = scalar_lea.vmem %s2022_s0, %s1241_s6 }
  0x19   : > { %v314_v0 = vld [vmem:[%s1450_s9] sm:$0xff]  ;;  %v316_v1 = vld [vmem:[%s1450_s9 + $0x8] sm:$0xff]  ;;  %v318_v2 = vld [vmem:[%s1450_s9 + $0x10] sm:$0xff] }
  0x1a   : > { %315 = vst [vmem:[%s1455_s10] sm:$0xff] %v314_v0  ;;  %v320_v3 = vld [vmem:[%s1450_s9 + $0x18] sm:$0xff]  ;;  %v322_v4 = vld [vmem:[%s1450_s9 + $0x20] sm:$0xff]  ;;  %v324_v5 = vld [vmem:[%s1450_s9 + $0x28] sm:$0xff] }
  0x1b   : > { %317 = vst [vmem:[%s1455_s10 + $0x8] sm:$0xff] %v316_v1  ;;  %v326_v6 = vld [vmem:[%s1450_s9 + $0x30] sm:$0xff]  ;;  %v328_v7 = vld [vmem:[%s1450_s9 + $0x38] sm:$0xff]  ;;  %v330_v8 = vld [vmem:[%s1450_s9 + $0x40] sm:$0xff] }
  0x1c   : > { %319 = vst [vmem:[%s1455_s10 + $0x10] sm:$0xff] %v318_v2  ;;  %v332_v9 = vld [vmem:[%s1450_s9 + $0x48] sm:$0xff]  ;;  %v334_v10 = vld [vmem:[%s1450_s9 + $0x50] sm:$0xff]  ;;  %v336_v11 = vld [vmem:[%s1450_s9 + $0x58] sm:$0xff] }
  0x1d   : > { %321 = vst [vmem:[%s1455_s10 + $0x18] sm:$0xff] %v320_v3  ;;  %v338_v12 = vld [vmem:[%s1450_s9 + $0x60] sm:$0xff]  ;;  %v340_v13 = vld [vmem:[%s1450_s9 + $0x68] sm:$0xff]  ;;  %v342_v14 = vld [vmem:[%s1450_s9 + $0x70] sm:$0xff] }
  0x1e   : > { %323 = vst [vmem:[%s1455_s10 + $0x20] sm:$0xff] %v322_v4  ;;  %v344_v15 = vld [vmem:[%s1450_s9 + $0x78] sm:$0xff]  ;;  %v346_v16 = vld [vmem:[%s1450_s9 + $0x100] sm:$0xff]  ;;  %v348_v17 = vld [vmem:[%s1450_s9 + $0x108] sm:$0xff] }
  0x1f   : > { %325 = vst [vmem:[%s1455_s10 + $0x28] sm:$0xff] %v324_v5  ;;  %v350_v18 = vld [vmem:[%s1450_s9 + $0x110] sm:$0xff]  ;;  %v352_v19 = vld [vmem:[%s1450_s9 + $0x118] sm:$0xff]  ;;  %v354_v20 = vld [vmem:[%s1450_s9 + $0x120] sm:$0xff] }
  0x20   : > { %327 = vst [vmem:[%s1455_s10 + $0x30] sm:$0xff] %v326_v6  ;;  %v356_v21 = vld [vmem:[%s1450_s9 + $0x128] sm:$0xff]  ;;  %v358_v22 = vld [vmem:[%s1450_s9 + $0x130] sm:$0xff]  ;;  %v360_v23 = vld [vmem:[%s1450_s9 + $0x138] sm:$0xff] }
  0x21   : > { %329 = vst [vmem:[%s1455_s10 + $0x38] sm:$0xff] %v328_v7  ;;  %v362_v24 = vld [vmem:[%s1450_s9 + $0x140] sm:$0xff]  ;;  %v364_v25 = vld [vmem:[%s1450_s9 + $0x148] sm:$0xff]  ;;  %v366_v26 = vld [vmem:[%s1450_s9 + $0x150] sm:$0xff] }
  0x22   : > { %331 = vst [vmem:[%s1455_s10 + $0x40] sm:$0xff] %v330_v8  ;;  %v368_v27 = vld [vmem:[%s1450_s9 + $0x158] sm:$0xff]  ;;  %v370_v28 = vld [vmem:[%s1450_s9 + $0x160] sm:$0xff]  ;;  %v372_v29 = vld [vmem:[%s1450_s9 + $0x168] sm:$0xff] }
  0x23   : > { %333 = vst [vmem:[%s1455_s10 + $0x48] sm:$0xff] %v332_v9  ;;  %v374_v30 = vld [vmem:[%s1450_s9 + $0x170] sm:$0xff]  ;;  %v376_v31 = vld [vmem:[%s1450_s9 + $0x178] sm:$0xff]  ;;  %v378_v32 = vld [vmem:[%s1450_s9 + $0x200] sm:$0xff] }
  0x24   : > { %335 = vst [vmem:[%s1455_s10 + $0x50] sm:$0xff] %v334_v10  ;;  %v380_v33 = vld [vmem:[%s1450_s9 + $0x208] sm:$0xff]  ;;  %v382_v34 = vld [vmem:[%s1450_s9 + $0x210] sm:$0xff]  ;;  %v384_v35 = vld [vmem:[%s1450_s9 + $0x218] sm:$0xff] }
  0x25   : > { %337 = vst [vmem:[%s1455_s10 + $0x58] sm:$0xff] %v336_v11  ;;  %v386_v36 = vld [vmem:[%s1450_s9 + $0x220] sm:$0xff]  ;;  %v388_v37 = vld [vmem:[%s1450_s9 + $0x228] sm:$0xff]  ;;  %v390_v38 = vld [vmem:[%s1450_s9 + $0x230] sm:$0xff] }
  0x26   : > { %339 = vst [vmem:[%s1455_s10 + $0x60] sm:$0xff] %v338_v12  ;;  %v392_v39 = vld [vmem:[%s1450_s9 + $0x238] sm:$0xff]  ;;  %v394_v40 = vld [vmem:[%s1450_s9 + $0x240] sm:$0xff]  ;;  %v396_v41 = vld [vmem:[%s1450_s9 + $0x248] sm:$0xff] }
  0x27   : > { %341 = vst [vmem:[%s1455_s10 + $0x68] sm:$0xff] %v340_v13  ;;  %v398_v42 = vld [vmem:[%s1450_s9 + $0x250] sm:$0xff]  ;;  %v400_v43 = vld [vmem:[%s1450_s9 + $0x258] sm:$0xff]  ;;  %v402_v44 = vld [vmem:[%s1450_s9 + $0x260] sm:$0xff] }
  0x28   : > { %343 = vst [vmem:[%s1455_s10 + $0x70] sm:$0xff] %v342_v14  ;;  %v404_v45 = vld [vmem:[%s1450_s9 + $0x268] sm:$0xff]  ;;  %v406_v46 = vld [vmem:[%s1450_s9 + $0x270] sm:$0xff]  ;;  %v408_v47 = vld [vmem:[%s1450_s9 + $0x278] sm:$0xff] }
  0x29   : > { %345 = vst [vmem:[%s1455_s10 + $0x78] sm:$0xff] %v344_v15  ;;  %v410_v48 = vld [vmem:[%s1450_s9 + $0x300] sm:$0xff]  ;;  %v412_v49 = vld [vmem:[%s1450_s9 + $0x308] sm:$0xff]  ;;  %v414_v50 = vld [vmem:[%s1450_s9 + $0x310] sm:$0xff] }
  0x2a   : > { %347 = vst [vmem:[%s1455_s10 + $0x80] sm:$0xff] %v346_v16  ;;  %v416_v51 = vld [vmem:[%s1450_s9 + $0x318] sm:$0xff]  ;;  %v418_v52 = vld [vmem:[%s1450_s9 + $0x320] sm:$0xff]  ;;  %v420_v53 = vld [vmem:[%s1450_s9 + $0x328] sm:$0xff] }
  0x2b   : > { %349 = vst [vmem:[%s1455_s10 + $0x88] sm:$0xff] %v348_v17  ;;  %v422_v54 = vld [vmem:[%s1450_s9 + $0x330] sm:$0xff]  ;;  %v424_v55 = vld [vmem:[%s1450_s9 + $0x338] sm:$0xff]  ;;  %v426_v56 = vld [vmem:[%s1450_s9 + $0x340] sm:$0xff] }
  0x2c   : > { %351 = vst [vmem:[%s1455_s10 + $0x90] sm:$0xff] %v350_v18  ;;  %v428_v57 = vld [vmem:[%s1450_s9 + $0x348] sm:$0xff]  ;;  %v430_v58 = vld [vmem:[%s1450_s9 + $0x350] sm:$0xff]  ;;  %v432_v59 = vld [vmem:[%s1450_s9 + $0x358] sm:$0xff] }
  0x2d   : > { %353 = vst [vmem:[%s1455_s10 + $0x98] sm:$0xff] %v352_v19  ;;  %v434_v60 = vld [vmem:[%s1450_s9 + $0x360] sm:$0xff]  ;;  %v436_v61 = vld [vmem:[%s1450_s9 + $0x368] sm:$0xff]  ;;  %v438_v62 = vld [vmem:[%s1450_s9 + $0x370] sm:$0xff] }
  0x2e   : > { %355 = vst [vmem:[%s1455_s10 + $0xa0] sm:$0xff] %v354_v20  ;;  %v440_v63 = vld [vmem:[%s1450_s9 + $0x378] sm:$0xff] }
  0x2f   : > { %357 = vst [vmem:[%s1455_s10 + $0xa8] sm:$0xff] %v356_v21 }
  0x30   : > { %359 = vst [vmem:[%s1455_s10 + $0xb0] sm:$0xff] %v358_v22 }
  0x31   : > { %361 = vst [vmem:[%s1455_s10 + $0xb8] sm:$0xff] %v360_v23 }
  0x32   : > { %363 = vst [vmem:[%s1455_s10 + $0xc0] sm:$0xff] %v362_v24 }
  0x33   : > { %365 = vst [vmem:[%s1455_s10 + $0xc8] sm:$0xff] %v364_v25 }
  0x34   : > { %367 = vst [vmem:[%s1455_s10 + $0xd0] sm:$0xff] %v366_v26 }
  0x35   : > { %369 = vst [vmem:[%s1455_s10 + $0xd8] sm:$0xff] %v368_v27 }
  0x36   : > { %371 = vst [vmem:[%s1455_s10 + $0xe0] sm:$0xff] %v370_v28 }
  0x37   : > { %373 = vst [vmem:[%s1455_s10 + $0xe8] sm:$0xff] %v372_v29 }
  0x38   : > { %375 = vst [vmem:[%s1455_s10 + $0xf0] sm:$0xff] %v374_v30 }
  0x39   : > { %377 = vst [vmem:[%s1455_s10 + $0xf8] sm:$0xff] %v376_v31 }
  0x3a   : > { %379 = vst [vmem:[%s1455_s10 + $0x100] sm:$0xff] %v378_v32 }
  0x3b   : > { %381 = vst [vmem:[%s1455_s10 + $0x108] sm:$0xff] %v380_v33 }
  0x3c   : > { %383 = vst [vmem:[%s1455_s10 + $0x110] sm:$0xff] %v382_v34 }
  0x3d   : > { %385 = vst [vmem:[%s1455_s10 + $0x118] sm:$0xff] %v384_v35 }
  0x3e   : > { %387 = vst [vmem:[%s1455_s10 + $0x120] sm:$0xff] %v386_v36 }
  0x3f   : > { %389 = vst [vmem:[%s1455_s10 + $0x128] sm:$0xff] %v388_v37 }
  0x40   : > { %391 = vst [vmem:[%s1455_s10 + $0x130] sm:$0xff] %v390_v38 }
  0x41   : > { %393 = vst [vmem:[%s1455_s10 + $0x138] sm:$0xff] %v392_v39 }
  0x42   : > { %395 = vst [vmem:[%s1455_s10 + $0x140] sm:$0xff] %v394_v40 }
  0x43   : > { %397 = vst [vmem:[%s1455_s10 + $0x148] sm:$0xff] %v396_v41 }
  0x44   : > { %399 = vst [vmem:[%s1455_s10 + $0x150] sm:$0xff] %v398_v42 }
  0x45   : > { %401 = vst [vmem:[%s1455_s10 + $0x158] sm:$0xff] %v400_v43 }
  0x46   : > { %403 = vst [vmem:[%s1455_s10 + $0x160] sm:$0xff] %v402_v44 }
  0x47   : > { %405 = vst [vmem:[%s1455_s10 + $0x168] sm:$0xff] %v404_v45 }
  0x48   : > { %407 = vst [vmem:[%s1455_s10 + $0x170] sm:$0xff] %v406_v46 }
  0x49   : > { %409 = vst [vmem:[%s1455_s10 + $0x178] sm:$0xff] %v408_v47 }
  0x4a   : > { %411 = vst [vmem:[%s1455_s10 + $0x180] sm:$0xff] %v410_v48 }
  0x4b   : > { %413 = vst [vmem:[%s1455_s10 + $0x188] sm:$0xff] %v412_v49 }
  0x4c   : > { %415 = vst [vmem:[%s1455_s10 + $0x190] sm:$0xff] %v414_v50 }
  0x4d   : > { %417 = vst [vmem:[%s1455_s10 + $0x198] sm:$0xff] %v416_v51 }
  0x4e   : > { %419 = vst [vmem:[%s1455_s10 + $0x1a0] sm:$0xff] %v418_v52 }
  0x4f   : > { %421 = vst [vmem:[%s1455_s10 + $0x1a8] sm:$0xff] %v420_v53 }
  0x50   : > { %423 = vst [vmem:[%s1455_s10 + $0x1b0] sm:$0xff] %v422_v54 }
  0x51   : > { %425 = vst [vmem:[%s1455_s10 + $0x1b8] sm:$0xff] %v424_v55 }
  0x52   : > { %427 = vst [vmem:[%s1455_s10 + $0x1c0] sm:$0xff] %v426_v56 }
  0x53   : > { %429 = vst [vmem:[%s1455_s10 + $0x1c8] sm:$0xff] %v428_v57 }
  0x54   : > { %431 = vst [vmem:[%s1455_s10 + $0x1d0] sm:$0xff] %v430_v58 }
  0x55   : > { %433 = vst [vmem:[%s1455_s10 + $0x1d8] sm:$0xff] %v432_v59 }
  0x56   : > { %435 = vst [vmem:[%s1455_s10 + $0x1e0] sm:$0xff] %v434_v60 }
  0x57   : > { %437 = vst [vmem:[%s1455_s10 + $0x1e8] sm:$0xff] %v436_v61 }
  0x58   : > { %439 = vst [vmem:[%s1455_s10 + $0x1f0] sm:$0xff] %v438_v62 }
  0x59   : > { %441 = vst [vmem:[%s1455_s10 + $0x1f8] sm:$0xff] %v440_v63 }
  0x5a PF: > { %p1242_p9 = scmp.ge.s32.totalorder %s1363_s18, 1  ;;  %p458_p10 = scmp.lt.s32.totalorder %s1363_s18, 5 }
  0x5c   : > { %p459_p11 = pnand %p1242_p9, %p458_p10 }
  0x5d   : > { %p494_p12 = scmp.lt.s32.totalorder (!%p459_p11), %s1351_s15, 1  ;;  %s465_s29 = sand.u32 (!%p459_p11), 1, %s1339_s12  }
  0x5e   : > { %462 = sbr.rel (%p459_p11) target bundleno = 265 (0x109), region = 66  ;;  %s1593_s30 = sshll.u32 (!%p459_p11), %s465_s29, 9 }
  0x5f   : > { %s1596_s4 = scalar_lea.vmem (!%p459_p11), [#allocation2], %s1593_s30  ;;  %s1638_s12 = scalar_lea.vmem (!%p459_p11), [#allocation3], %s1593_s30 }
  0x63   : > { %s495_s11 = scalar_select %p494_p12, %s1351_s15, 1  ;;  %v519_v12 = vld [vmem:[%s1596_s4] sm:$0xff]  ;;  %v520_v15 = vld [vmem:[%s1596_s4 + $0x8] sm:$0xff]  ;;  %v521_v16 = vld [vmem:[%s1596_s4 + $0x10] sm:$0xff] }
  0x64   : > { %v522_v17 = vld [vmem:[%s1596_s4 + $0x18] sm:$0xff]  ;;  %v523_v18 = vld [vmem:[%s1596_s4 + $0x20] sm:$0xff]  ;;  %v524_v19 = vld [vmem:[%s1596_s4 + $0x28] sm:$0xff]  ;;  %s1246_s5 = sshll.u32 (%p1433_p6), %s1347_s14, 4  ;;  %s1247_s6 = sshll.u32 (%p1433_p6), %s1351_s15, 7 }
  0x65   : > { %s496_s24 = scalar_lea.vmem %s2023_s1, %s495_s11  ;;  %s499_s28 = scalar_lea.vmem %s2024_s2, %s495_s11  ;;  %v525_v21 = vld [vmem:[%s1596_s4 + $0x30] sm:$0xff]  ;;  %v526_v26 = vld [vmem:[%s1596_s4 + $0x38] sm:$0xff]  ;;  %v527_v27 = vld [vmem:[%s1596_s4 + $0x40] sm:$0xff] }
  0x66   : > { %v501_v0 = vld [vmem:[%s496_s24] sm:$0x1]  ;;  %v528_v33 = vld [vmem:[%s1596_s4 + $0x48] sm:$0xff]  ;;  %v529_v34 = vld [vmem:[%s1596_s4 + $0x50] sm:$0xff]  ;;  %s854_s7 = sadd.s32 (%p1433_p6), %s1247_s6, %s1246_s5 }
  0x67   : > { %v503_v1 = vld [vmem:[%s499_s28] sm:$0x1]  ;;  %v502_v2 = vmul.f32 0.0009765625, %v501_v0  ;;  %v530_v41 = vld [vmem:[%s1596_s4 + $0x58] sm:$0xff]  ;;  %v532_v51 = vld [vmem:[%s1596_s4 + $0x68] sm:$0xff]  ;;  %s1248_s8 = sshll.u32 (%p1433_p6), %s854_s7, 3 }
  0x68   : > { %v504_v3 = vmul.f32 0.0009765625, %v503_v1  ;;  %v531_v46 = vld [vmem:[%s1596_s4 + $0x60] sm:$0xff]  ;;  %v533_v55 = vld [vmem:[%s1596_s4 + $0x70] sm:$0xff]  ;;  %v534_v59 = vld [vmem:[%s1596_s4 + $0x78] sm:$0xff]  ;;  %s1873_s10 = scalar_lea.vmem (%p1433_p6), %s2025_s3, %s1248_s8 }
  0x69   : > { %v505_v4 = vmul.f32 %v502_v2, %v502_v2  ;;  %v1599_v13 = vperm.slane %v502_v2, 0  ;;  %v535_v63 = vld [vmem:[%s1596_s4 + $0x80] sm:$0xff] }
  0x6b   : > { %v506_v5 = vsub.f32 %v504_v3, %v505_v4  ;;  %v586_v22 = vsub.f32 %v519_v12, %v1599_v13  ;;  %v587_v23 = vsub.f32 %v520_v15, %v1599_v13  ;;  %v588_v24 = vsub.f32 %v521_v16, %v1599_v13  ;;  %v536_v3 = vld [vmem:[%s1596_s4 + $0x88] sm:$0xff]  ;;  %v539_v16 = vld [vmem:[%s1596_s4 + $0xa0] sm:$0xff] }
  0x6c   : > { %v589_v25 = vsub.f32 %v522_v17, %v1599_v13  ;;  %v590_v29 = vsub.f32 %v523_v18, %v1599_v13  ;;  %v591_v30 = vsub.f32 %v524_v19, %v1599_v13  ;;  %v592_v32 = vsub.f32 %v525_v21, %v1599_v13 }
  0x6d   : > { %v507_v6 = vmax.f32 %v506_v5, 0.0  ;;  %v593_v35 = vsub.f32 %v526_v26, %v1599_v13  ;;  %v594_v36 = vsub.f32 %v527_v27, %v1599_v13  ;;  %v595_v44 = vsub.f32 %v528_v33, %v1599_v13  ;;  %v543_v33 = vld [vmem:[%s1596_s4 + $0xc0] sm:$0xff] }
  0x6e   : > { %v596_v45 = vsub.f32 %v529_v34, %v1599_v13  ;;  %v597_v54 = vsub.f32 %v530_v41, %v1599_v13  ;;  %v598_v58 = vsub.f32 %v531_v46, %v1599_v13  ;;  %v599_v62 = vsub.f32 %v532_v51, %v1599_v13  ;;  %v545_v41 = vld [vmem:[%s1596_s4 + $0xd0] sm:$0xff] }
  0x6f   : > { %v508_v7 = vadd.f32 1e-05, %v507_v6  ;;  %v600_v2 = vsub.f32 %v533_v55, %v1599_v13  ;;  %v601_v6 = vsub.f32 %v534_v59, %v1599_v13  ;;  %v603_v15 = vsub.f32 %v536_v3, %v1599_v13 }
  0x70   : > { %v606_v27 = vsub.f32 %v539_v16, %v1599_v13 }
  0x71   : > { %1307 = vrsqrt.f32 %v508_v7  ;;  %vm515_vm0 = vweird.f32 %v508_v7 }
  0x77   : > { %v1308_v8 = vpop.eup %1307 }
  0x78   : > { %v510_v9 = vmul.f32 %v1308_v8, %v508_v7  ;;  %vm516_vm1 = vweird.f32 %v1308_v8  ;;  %v537_v7 = vld [vmem:[%s1596_s4 + $0x90] sm:$0xff] }
  0x79   : > { %vm517_vm2 = vmor %vm515_vm0, %vm516_vm1  ;;  %v604_v19 = vsub.f32 %v537_v7, %v1599_v13 }
  0x7a   : > { %v511_v10 = vmul.f32 %v1308_v8, %v510_v9 }
  0x7c   : > { %v512_v11 = vmul.f32 0.5, %v511_v10  ;;  %v602_v10 = vsub.f32 %v535_v63, %v1599_v13 }
  0x7e   : > { %v513_v14 = vsub.f32 1.5, %v512_v11  ;;  %v538_v11 = vld [vmem:[%s1596_s4 + $0x98] sm:$0xff] }
  0x80   : > { %v514_v20 = vmul.f32 %v1308_v8, %v513_v14 }
  0x82   : > { %v518_v28 = vsel %vm517_vm2, %v1308_v8, %v514_v20  ;;  %v540_v20 = vld [vmem:[%s1596_s4 + $0xa8] sm:$0xff] }
  0x83   : > { %v1615_v31 = vperm.slane %v518_v28, 0  ;;  %v542_v28 = vld [vmem:[%s1596_s4 + $0xb8] sm:$0xff] }
  0x85   : > { %v653_v37 = vmul.f32 %v1615_v31, %v586_v22  ;;  %v654_v38 = vmul.f32 %v1615_v31, %v587_v23  ;;  %v655_v39 = vmul.f32 %v1615_v31, %v588_v24  ;;  %v656_v40 = vmul.f32 %v1615_v31, %v589_v25  ;;  %v541_v24 = vld [vmem:[%s1596_s4 + $0xb0] sm:$0xff] }
  0x86   : > { %v657_v42 = vmul.f32 %v1615_v31, %v590_v29  ;;  %v658_v43 = vmul.f32 %v1615_v31, %v591_v30  ;;  %v659_v50 = vmul.f32 %v1615_v31, %v592_v32  ;;  %v660_v53 = vmul.f32 %v1615_v31, %v593_v35 }
  0x87   : > { %v717_v47 = vmax.f32 %v653_v37, 0.0  ;;  %v718_v48 = vmax.f32 %v654_v38, 0.0  ;;  %v719_v49 = vmax.f32 %v655_v39, 0.0  ;;  %v720_v52 = vmax.f32 %v656_v40, 0.0  ;;  %v544_v37 = vld [vmem:[%s1596_s4 + $0xc8] sm:$0xff] }
  0x88   : > { %v721_v56 = vmax.f32 %v657_v42, 0.0  ;;  %v661_v57 = vmul.f32 %v1615_v31, %v594_v36  ;;  %v722_v60 = vmax.f32 %v658_v43, 0.0  ;;  %v662_v61 = vmul.f32 %v1615_v31, %v595_v44 }
  0x89   : > { %781 = vst [vmem:[%s1638_s12] sm:$0xff] %v717_v47  ;;  %v723_v0 = vmax.f32 %v659_v50, 0.0  ;;  %v663_v1 = vmul.f32 %v1615_v31, %v596_v45  ;;  %v724_v4 = vmax.f32 %v660_v53, 0.0  ;;  %v664_v5 = vmul.f32 %v1615_v31, %v597_v54  ;;  %v546_v45 = vld [vmem:[%s1596_s4 + $0xd8] sm:$0xff]  ;;  %v548_v53 = vld [vmem:[%s1596_s4 + $0xe8] sm:$0xff] }
  0x8a   : > { %782 = vst [vmem:[%s1638_s12 + $0x8] sm:$0xff] %v718_v48  ;;  %v725_v8 = vmax.f32 %v661_v57, 0.0  ;;  %v665_v9 = vmul.f32 %v1615_v31, %v598_v58  ;;  %v726_v12 = vmax.f32 %v662_v61, 0.0  ;;  %v666_v14 = vmul.f32 %v1615_v31, %v599_v62  ;;  %v549_v57 = vld [vmem:[%s1596_s4 + $0xf0] sm:$0xff]  ;;  %v550_v61 = vld [vmem:[%s1596_s4 + $0xf8] sm:$0xff] }
  0x8b   : > { %783 = vst [vmem:[%s1638_s12 + $0x10] sm:$0xff] %v719_v49  ;;  %v727_v17 = vmax.f32 %v663_v1, 0.0  ;;  %v667_v18 = vmul.f32 %v1615_v31, %v600_v2  ;;  %v728_v21 = vmax.f32 %v664_v5, 0.0  ;;  %v668_v22 = vmul.f32 %v1615_v31, %v601_v6  ;;  %v547_v49 = vld [vmem:[%s1596_s4 + $0xe0] sm:$0xff]  ;;  %v552_v5 = vld [vmem:[%s1596_s4 + $0x108] sm:$0xff] }
  0x8c   : > { %784 = vst [vmem:[%s1638_s12 + $0x18] sm:$0xff] %v720_v52  ;;  %v605_v23 = vsub.f32 %v538_v11, %v1599_v13  ;;  %v729_v25 = vmax.f32 %v665_v9, 0.0  ;;  %v669_v26 = vmul.f32 %v1615_v31, %v602_v10  ;;  %v730_v29 = vmax.f32 %v666_v14, 0.0  ;;  %v551_v1 = vld [vmem:[%s1596_s4 + $0x100] sm:$0xff]  ;;  %v553_v9 = vld [vmem:[%s1596_s4 + $0x110] sm:$0xff]  ;;  %v554_v14 = vld [vmem:[%s1596_s4 + $0x118] sm:$0xff] }
  0x8d   : > { %785 = vst [vmem:[%s1638_s12 + $0x20] sm:$0xff] %v721_v56  ;;  %v670_v30 = vmul.f32 %v1615_v31, %v603_v15  ;;  %v607_v32 = vsub.f32 %v540_v20, %v1599_v13  ;;  %v731_v34 = vmax.f32 %v667_v18, 0.0  ;;  %v671_v35 = vmul.f32 %v1615_v31, %v604_v19  ;;  %v555_v18 = vld [vmem:[%s1596_s4 + $0x120] sm:$0xff] }
  0x8e   : > { %786 = vst [vmem:[%s1638_s12 + $0x28] sm:$0xff] %v722_v60  ;;  %v608_v36 = vsub.f32 %v541_v24, %v1599_v13  ;;  %v732_v38 = vmax.f32 %v668_v22, 0.0  ;;  %v672_v39 = vmul.f32 %v1615_v31, %v605_v23  ;;  %v609_v40 = vsub.f32 %v542_v28, %v1599_v13  ;;  %v556_v22 = vld [vmem:[%s1596_s4 + $0x128] sm:$0xff] }
  0x8f   : > { %787 = vst [vmem:[%s1638_s12 + $0x30] sm:$0xff] %v723_v0  ;;  %v733_v42 = vmax.f32 %v669_v26, 0.0  ;;  %v673_v43 = vmul.f32 %v1615_v31, %v606_v27  ;;  %v610_v44 = vsub.f32 %v543_v33, %v1599_v13  ;;  %v734_v46 = vmax.f32 %v670_v30, 0.0  ;;  %v557_v26 = vld [vmem:[%s1596_s4 + $0x130] sm:$0xff]  ;;  %v558_v30 = vld [vmem:[%s1596_s4 + $0x138] sm:$0xff] }
  0x90   : > { %788 = vst [vmem:[%s1638_s12 + $0x38] sm:$0xff] %v724_v4  ;;  %v674_v47 = vmul.f32 %v1615_v31, %v607_v32  ;;  %v611_v48 = vsub.f32 %v544_v37, %v1599_v13  ;;  %v735_v50 = vmax.f32 %v671_v35, 0.0  ;;  %v675_v51 = vmul.f32 %v1615_v31, %v608_v36  ;;  %v559_v35 = vld [vmem:[%s1596_s4 + $0x140] sm:$0xff] }
  0x91   : > { %789 = vst [vmem:[%s1638_s12 + $0x40] sm:$0xff] %v725_v8  ;;  %v612_v52 = vsub.f32 %v545_v41, %v1599_v13  ;;  %v736_v54 = vmax.f32 %v672_v39, 0.0  ;;  %v676_v55 = vmul.f32 %v1615_v31, %v609_v40  ;;  %v613_v56 = vsub.f32 %v546_v45, %v1599_v13  ;;  %v560_v39 = vld [vmem:[%s1596_s4 + $0x148] sm:$0xff] }
  0x92   : > { %790 = vst [vmem:[%s1638_s12 + $0x48] sm:$0xff] %v726_v12  ;;  %v737_v58 = vmax.f32 %v673_v43, 0.0  ;;  %v677_v59 = vmul.f32 %v1615_v31, %v610_v44  ;;  %v614_v60 = vsub.f32 %v547_v49, %v1599_v13  ;;  %v738_v62 = vmax.f32 %v674_v47, 0.0  ;;  %v561_v43 = vld [vmem:[%s1596_s4 + $0x150] sm:$0xff]  ;;  %v562_v47 = vld [vmem:[%s1596_s4 + $0x158] sm:$0xff] }
  0x93   : > { %791 = vst [vmem:[%s1638_s12 + $0x50] sm:$0xff] %v727_v17  ;;  %v678_v63 = vmul.f32 %v1615_v31, %v611_v48  ;;  %v615_v0 = vsub.f32 %v548_v53, %v1599_v13  ;;  %v739_v2 = vmax.f32 %v675_v51, 0.0  ;;  %v679_v3 = vmul.f32 %v1615_v31, %v612_v52  ;;  %v582_v48 = vld [vmem:[%s1596_s4 + $0x1f8] sm:$0xff]  ;;  %v563_v52 = vld [vmem:[%s1596_s4 + $0x160] sm:$0xff] }
  0x94   : > { %792 = vst [vmem:[%s1638_s12 + $0x58] sm:$0xff] %v728_v21  ;;  %v616_v4 = vsub.f32 %v549_v57, %v1599_v13  ;;  %v740_v6 = vmax.f32 %v676_v55, 0.0  ;;  %v680_v7 = vmul.f32 %v1615_v31, %v613_v56  ;;  %v617_v8 = vsub.f32 %v550_v61, %v1599_v13  ;;  %v564_v56 = vld [vmem:[%s1596_s4 + $0x168] sm:$0xff] }
  0x95   : > { %793 = vst [vmem:[%s1638_s12 + $0x60] sm:$0xff] %v729_v25  ;;  %v741_v10 = vmax.f32 %v677_v59, 0.0  ;;  %v681_v11 = vmul.f32 %v1615_v31, %v614_v60  ;;  %v618_v12 = vsub.f32 %v551_v1, %v1599_v13  ;;  %v742_v15 = vmax.f32 %v678_v63, 0.0  ;;  %v565_v60 = vld [vmem:[%s1596_s4 + $0x170] sm:$0xff]  ;;  %v566_v1 = vld [vmem:[%s1596_s4 + $0x178] sm:$0xff] }
  0x96   : > { %794 = vst [vmem:[%s1638_s12 + $0x68] sm:$0xff] %v730_v29  ;;  %v682_v16 = vmul.f32 %v1615_v31, %v615_v0  ;;  %v619_v17 = vsub.f32 %v552_v5, %v1599_v13  ;;  %v743_v19 = vmax.f32 %v679_v3, 0.0  ;;  %v683_v20 = vmul.f32 %v1615_v31, %v616_v4  ;;  %v567_v5 = vld [vmem:[%s1596_s4 + $0x180] sm:$0xff] }
  0x97   : > { %795 = vst [vmem:[%s1638_s12 + $0x70] sm:$0xff] %v731_v34  ;;  %v620_v21 = vsub.f32 %v553_v9, %v1599_v13  ;;  %v744_v23 = vmax.f32 %v680_v7, 0.0  ;;  %v684_v24 = vmul.f32 %v1615_v31, %v617_v8  ;;  %v621_v25 = vsub.f32 %v554_v14, %v1599_v13 }
  0x98   : > { %796 = vst [vmem:[%s1638_s12 + $0x78] sm:$0xff] %v732_v38  ;;  %v745_v27 = vmax.f32 %v681_v11, 0.0  ;;  %v685_v28 = vmul.f32 %v1615_v31, %v618_v12  ;;  %v622_v29 = vsub.f32 %v555_v18, %v1599_v13  ;;  %v746_v32 = vmax.f32 %v682_v16, 0.0 }
  0x99   : > { %797 = vst [vmem:[%s1638_s12 + $0x80] sm:$0xff] %v733_v42  ;;  %v686_v33 = vmul.f32 %v1615_v31, %v619_v17  ;;  %v623_v34 = vsub.f32 %v556_v22, %v1599_v13  ;;  %v747_v36 = vmax.f32 %v683_v20, 0.0  ;;  %v687_v37 = vmul.f32 %v1615_v31, %v620_v21 }
  0x9a   : > { %798 = vst [vmem:[%s1638_s12 + $0x88] sm:$0xff] %v734_v46  ;;  %v624_v38 = vsub.f32 %v557_v26, %v1599_v13  ;;  %v748_v40 = vmax.f32 %v684_v24, 0.0  ;;  %v688_v41 = vmul.f32 %v1615_v31, %v621_v25  ;;  %v625_v42 = vsub.f32 %v558_v30, %v1599_v13 }
  0x9b   : > { %799 = vst [vmem:[%s1638_s12 + $0x90] sm:$0xff] %v735_v50  ;;  %v749_v44 = vmax.f32 %v685_v28, 0.0  ;;  %v689_v45 = vmul.f32 %v1615_v31, %v622_v29  ;;  %v626_v46 = vsub.f32 %v559_v35, %v1599_v13  ;;  %v750_v49 = vmax.f32 %v686_v33, 0.0 }
  0x9c   : > { %800 = vst [vmem:[%s1638_s12 + $0x98] sm:$0xff] %v736_v54  ;;  %v690_v50 = vmul.f32 %v1615_v31, %v623_v34  ;;  %v627_v51 = vsub.f32 %v560_v39, %v1599_v13  ;;  %v751_v53 = vmax.f32 %v687_v37, 0.0  ;;  %v691_v54 = vmul.f32 %v1615_v31, %v624_v38 }
  0x9d   : > { %801 = vst [vmem:[%s1638_s12 + $0xa0] sm:$0xff] %v737_v58  ;;  %v628_v55 = vsub.f32 %v561_v43, %v1599_v13  ;;  %v752_v57 = vmax.f32 %v688_v41, 0.0  ;;  %v692_v58 = vmul.f32 %v1615_v31, %v625_v42  ;;  %v629_v59 = vsub.f32 %v562_v47, %v1599_v13 }
  0x9e   : > { %802 = vst [vmem:[%s1638_s12 + $0xa8] sm:$0xff] %v738_v62  ;;  %v649_v61 = vsub.f32 %v582_v48, %v1599_v13  ;;  %v753_v62 = vmax.f32 %v689_v45, 0.0  ;;  %v693_v63 = vmul.f32 %v1615_v31, %v626_v46  ;;  %v630_v0 = vsub.f32 %v563_v52, %v1599_v13  ;;  %v577_v48 = vld [vmem:[%s1596_s4 + $0x1d0] sm:$0xff]  ;;  %v578_v52 = vld [vmem:[%s1596_s4 + $0x1d8] sm:$0xff] }
  0x9f   : > { %803 = vst [vmem:[%s1638_s12 + $0xb0] sm:$0xff] %v739_v2  ;;  %v754_v2 = vmax.f32 %v690_v50, 0.0  ;;  %v694_v3 = vmul.f32 %v1615_v31, %v627_v51  ;;  %v631_v4 = vsub.f32 %v564_v56, %v1599_v13  ;;  %v755_v7 = vmax.f32 %v691_v54, 0.0  ;;  %v579_v56 = vld [vmem:[%s1596_s4 + $0x1e0] sm:$0xff] }
  0xa0   : > { %804 = vst [vmem:[%s1638_s12 + $0xb8] sm:$0xff] %v740_v6  ;;  %v1779_v6 = vmul.f32 %v1615_v31, %v649_v61  ;;  %v695_v8 = vmul.f32 %v1615_v31, %v628_v55  ;;  %v632_v9 = vsub.f32 %v565_v60, %v1599_v13  ;;  %v756_v11 = vmax.f32 %v692_v58, 0.0  ;;  %v580_v60 = vld [vmem:[%s1596_s4 + $0x1e8] sm:$0xff] }
  0xa1   : > { %805 = vst [vmem:[%s1638_s12 + $0xc0] sm:$0xff] %v741_v10  ;;  %v568_v10 = vld [vmem:[%s1596_s4 + $0x188] sm:$0xff]  ;;  %v696_v12 = vmul.f32 %v1615_v31, %v629_v59  ;;  %v633_v14 = vsub.f32 %v566_v1, %v1599_v13  ;;  %v757_v16 = vmax.f32 %v693_v63, 0.0  ;;  %v697_v17 = vmul.f32 %v1615_v31, %v630_v0  ;;  %v581_v0 = vld [vmem:[%s1596_s4 + $0x1f0] sm:$0xff] }
  0xa2   : > { %806 = vst [vmem:[%s1638_s12 + $0xc8] sm:$0xff] %v742_v15  ;;  %v569_v15 = vld [vmem:[%s1596_s4 + $0x190] sm:$0xff]  ;;  %v634_v18 = vsub.f32 %v567_v5, %v1599_v13  ;;  %v758_v20 = vmax.f32 %v694_v3, 0.0  ;;  %v698_v21 = vmul.f32 %v1615_v31, %v631_v4  ;;  %v635_v22 = vsub.f32 %v568_v10, %v1599_v13 }
  0xa3   : > { %807 = vst [vmem:[%s1638_s12 + $0xd0] sm:$0xff] %v743_v19  ;;  %v570_v19 = vld [vmem:[%s1596_s4 + $0x198] sm:$0xff]  ;;  %v759_v24 = vmax.f32 %v695_v8, 0.0  ;;  %v699_v25 = vmul.f32 %v1615_v31, %v632_v9  ;;  %v636_v26 = vsub.f32 %v569_v15, %v1599_v13  ;;  %v760_v28 = vmax.f32 %v696_v12, 0.0 }
  0xa4   : > { %808 = vst [vmem:[%s1638_s12 + $0xd8] sm:$0xff] %v744_v23  ;;  %v571_v23 = vld [vmem:[%s1596_s4 + $0x1a0] sm:$0xff]  ;;  %v700_v29 = vmul.f32 %v1615_v31, %v633_v14  ;;  %v637_v30 = vsub.f32 %v570_v19, %v1599_v13  ;;  %v761_v33 = vmax.f32 %v697_v17, 0.0  ;;  %v701_v34 = vmul.f32 %v1615_v31, %v634_v18 }
  0xa5   : > { %809 = vst [vmem:[%s1638_s12 + $0xe0] sm:$0xff] %v745_v27  ;;  %v572_v27 = vld [vmem:[%s1596_s4 + $0x1a8] sm:$0xff]  ;;  %v638_v35 = vsub.f32 %v571_v23, %v1599_v13  ;;  %v762_v37 = vmax.f32 %v698_v21, 0.0  ;;  %v702_v38 = vmul.f32 %v1615_v31, %v635_v22  ;;  %v763_v41 = vmax.f32 %v699_v25, 0.0  ;;  %v1017_v25 = vld [vmem:[%s1638_s12 + $0x18] sm:$0xff] (%p1433_p6) }
  0xa6   : > { %810 = vst [vmem:[%s1638_s12 + $0xe8] sm:$0xff] %v746_v32  ;;  %v573_v32 = vld [vmem:[%s1596_s4 + $0x1b0] sm:$0xff]  ;;  %v639_v39 = vsub.f32 %v572_v27, %v1599_v13  ;;  %v703_v42 = vmul.f32 %v1615_v31, %v636_v26  ;;  %v764_v45 = vmax.f32 %v700_v29, 0.0  ;;  %v704_v46 = vmul.f32 %v1615_v31, %v637_v30  ;;  %v1019_v26 = vld [vmem:[%s1638_s12 + $0x20] sm:$0xff] (%p1433_p6)  ;;  %v1021_v27 = vld [vmem:[%s1638_s12 + $0x28] sm:$0xff] (%p1433_p6) }
  0xa7   : > { %811 = vst [vmem:[%s1638_s12 + $0xf0] sm:$0xff] %v747_v36  ;;  %v574_v36 = vld [vmem:[%s1596_s4 + $0x1b8] sm:$0xff]  ;;  %v640_v43 = vsub.f32 %v573_v32, %v1599_v13  ;;  %v705_v50 = vmul.f32 %v1615_v31, %v638_v35  ;;  %v644_v59 = vsub.f32 %v577_v48, %v1599_v13  ;;  %v645_v63 = vsub.f32 %v578_v52, %v1599_v13  ;;  %v1027_v30 = vld [vmem:[%s1638_s12 + $0x40] sm:$0xff] (%p1433_p6)  ;;  %v1029_v32 = vld [vmem:[%s1638_s12 + $0x48] sm:$0xff] (%p1433_p6) }
  0xa8   : > { %812 = vst [vmem:[%s1638_s12 + $0xf8] sm:$0xff] %v748_v40  ;;  %v575_v40 = vld [vmem:[%s1596_s4 + $0x1c0] sm:$0xff]  ;;  %v641_v47 = vsub.f32 %v574_v36, %v1599_v13  ;;  %v706_v54 = vmul.f32 %v1615_v31, %v639_v39  ;;  %v768_v61 = vmax.f32 %v704_v46, 0.0  ;;  %v646_v3 = vsub.f32 %v579_v56, %v1599_v13  ;;  %v1025_v29 = vld [vmem:[%s1638_s12 + $0x38] sm:$0xff] (%p1433_p6)  ;;  %v1037_v36 = vld [vmem:[%s1638_s12 + $0x68] sm:$0xff] (%p1433_p6) }
  0xa9   : > { %813 = vst [vmem:[%s1638_s12 + $0x100] sm:$0xff] %v749_v44  ;;  %v576_v44 = vld [vmem:[%s1596_s4 + $0x1c8] sm:$0xff]  ;;  %v642_v51 = vsub.f32 %v575_v40, %v1599_v13  ;;  %v707_v58 = vmul.f32 %v1615_v31, %v640_v43  ;;  %v769_v1 = vmax.f32 %v705_v50, 0.0  ;;  %v711_v9 = vmul.f32 %v1615_v31, %v644_v59  ;;  %v1035_v35 = vld [vmem:[%s1638_s12 + $0x60] sm:$0xff] (%p1433_p6)  ;;  %v1057_v46 = vld [vmem:[%s1638_s12 + $0xb8] sm:$0xff] (%p1433_p6) }
  0xaa   : > { %814 = vst [vmem:[%s1638_s12 + $0x108] sm:$0xff] %v750_v49  ;;  %v765_v49 = vmax.f32 %v701_v34, 0.0  ;;  %v643_v55 = vsub.f32 %v576_v44, %v1599_v13  ;;  %v770_v4 = vmax.f32 %v706_v54, 0.0  ;;  %v648_v10 = vsub.f32 %v581_v0, %v1599_v13  ;;  %v1033_v34 = vld [vmem:[%s1638_s12 + $0x58] sm:$0xff] (%p1433_p6)  ;;  %v1043_v39 = vld [vmem:[%s1638_s12 + $0x80] sm:$0xff] (%p1433_p6)  ;;  %v1045_v40 = vld [vmem:[%s1638_s12 + $0x88] sm:$0xff] (%p1433_p6) }
  0xab   : > { %815 = vst [vmem:[%s1638_s12 + $0x110] sm:$0xff] %v751_v53  ;;  %v766_v53 = vmax.f32 %v702_v38, 0.0  ;;  %v771_v8 = vmax.f32 %v707_v58, 0.0  ;;  %v712_v12 = vmul.f32 %v1615_v31, %v645_v63  ;;  %v713_v15 = vmul.f32 %v1615_v31, %v646_v3  ;;  %v1041_v38 = vld [vmem:[%s1638_s12 + $0x78] sm:$0xff] (%p1433_p6)  ;;  %v1051_v43 = vld [vmem:[%s1638_s12 + $0xa0] sm:$0xff] (%p1433_p6)  ;;  %v1053_v44 = vld [vmem:[%s1638_s12 + $0xa8] sm:$0xff] (%p1433_p6) }
  0xac   : > { %816 = vst [vmem:[%s1638_s12 + $0x118] sm:$0xff] %v752_v57  ;;  %v767_v57 = vmax.f32 %v703_v42, 0.0  ;;  %v710_v5 = vmul.f32 %v1615_v31, %v643_v55  ;;  %v715_v18 = vmul.f32 %v1615_v31, %v648_v10  ;;  %v780_v23 = vmax.f32 %v1779_v6, 0.0  ;;  %v1013_v6 = vld [vmem:[%s1638_s12 + $0x8] sm:$0xff] (%p1433_p6)  ;;  %v1049_v42 = vld [vmem:[%s1638_s12 + $0x98] sm:$0xff] (%p1433_p6) }
  0xad   : > { %817 = vst [vmem:[%s1638_s12 + $0x120] sm:$0xff] %v753_v62  ;;  %v708_v62 = vmul.f32 %v1615_v31, %v641_v47  ;;  %v776_v19 = vmax.f32 %v712_v12, 0.0  ;;  %v1059_v47 = vld [vmem:[%s1638_s12 + $0xc0] sm:$0xff] (%p1433_p6)  ;;  %v1061_v48 = vld [vmem:[%s1638_s12 + $0xc8] sm:$0xff] (%p1433_p6)  ;;  %v1065_v50 = vld [vmem:[%s1638_s12 + $0xd8] sm:$0xff] (%p1433_p6) }
  0xae   : > { %818 = vst [vmem:[%s1638_s12 + $0x128] sm:$0xff] %v754_v2  ;;  %v709_v2 = vmul.f32 %v1615_v31, %v642_v51  ;;  %v779_v22 = vmax.f32 %v715_v18, 0.0  ;;  %v1067_v51 = vld [vmem:[%s1638_s12 + $0xe0] sm:$0xff] (%p1433_p6)  ;;  %v1069_v52 = vld [vmem:[%s1638_s12 + $0xe8] sm:$0xff] (%p1433_p6) }
  0xaf   : > { %819 = vst [vmem:[%s1638_s12 + $0x130] sm:$0xff] %v755_v7  ;;  %v647_v7 = vsub.f32 %v580_v60, %v1599_v13  ;;  %v775_v13 = vmax.f32 %v711_v9, 0.0  ;;  %v1073_v54 = vld [vmem:[%s1638_s12 + $0xf8] sm:$0xff] (%p1433_p6) }
  0xb0   : > { %820 = vst [vmem:[%s1638_s12 + $0x138] sm:$0xff] %v756_v11  ;;  %v772_v11 = vmax.f32 %v708_v62, 0.0  ;;  %v773_v14 = vmax.f32 %v709_v2, 0.0  ;;  %v1075_v55 = vld [vmem:[%s1638_s12 + $0x100] sm:$0xff] (%p1433_p6) }
  0xb1   : > { %821 = vst [vmem:[%s1638_s12 + $0x140] sm:$0xff] %v757_v16  ;;  %v774_v16 = vmax.f32 %v710_v5, 0.0  ;;  %v714_v17 = vmul.f32 %v1615_v31, %v647_v7  ;;  %v1011_v31 = vld [vmem:[%s1638_s12] sm:$0xff] (%p1433_p6)  ;;  %v1077_v56 = vld [vmem:[%s1638_s12 + $0x108] sm:$0xff] (%p1433_p6) }
  0xb2   : > { %822 = vst [vmem:[%s1638_s12 + $0x148] sm:$0xff] %v758_v20  ;;  %v777_v20 = vmax.f32 %v713_v15, 0.0 }
  0xb3   : > { %823 = vst [vmem:[%s1638_s12 + $0x150] sm:$0xff] %v759_v24  ;;  %v778_v21 = vmax.f32 %v714_v17, 0.0  ;;  %v1015_v24 = vld [vmem:[%s1638_s12 + $0x10] sm:$0xff] (%p1433_p6)  ;;  %v1081_v58 = vld [vmem:[%s1638_s12 + $0x118] sm:$0xff] (%p1433_p6) }
  0xb4   : > { %824 = vst [vmem:[%s1638_s12 + $0x158] sm:$0xff] %v760_v28  ;;  %v1023_v28 = vld [vmem:[%s1638_s12 + $0x30] sm:$0xff] (%p1433_p6)  ;;  %v1083_v59 = vld [vmem:[%s1638_s12 + $0x120] sm:$0xff] (%p1433_p6) }
  0xb5   : > { %825 = vst [vmem:[%s1638_s12 + $0x160] sm:$0xff] %v761_v33  ;;  %v1031_v33 = vld [vmem:[%s1638_s12 + $0x50] sm:$0xff] (%p1433_p6)  ;;  %v1085_v60 = vld [vmem:[%s1638_s12 + $0x128] sm:$0xff] (%p1433_p6) }
  0xb6   : > { %826 = vst [vmem:[%s1638_s12 + $0x168] sm:$0xff] %v762_v37  ;;  %v1039_v37 = vld [vmem:[%s1638_s12 + $0x70] sm:$0xff] (%p1433_p6) }
  0xb7   : > { %827 = vst [vmem:[%s1638_s12 + $0x170] sm:$0xff] %v763_v41  ;;  %v1047_v41 = vld [vmem:[%s1638_s12 + $0x90] sm:$0xff] (%p1433_p6)  ;;  %v1089_v62 = vld [vmem:[%s1638_s12 + $0x138] sm:$0xff] (%p1433_p6) }
  0xb8   : > { %828 = vst [vmem:[%s1638_s12 + $0x178] sm:$0xff] %v764_v45  ;;  %v1055_v45 = vld [vmem:[%s1638_s12 + $0xb0] sm:$0xff] (%p1433_p6)  ;;  %v1091_v63 = vld [vmem:[%s1638_s12 + $0x140] sm:$0xff] (%p1433_p6) }
  0xb9   : > { %829 = vst [vmem:[%s1638_s12 + $0x180] sm:$0xff] %v765_v49  ;;  %v1063_v49 = vld [vmem:[%s1638_s12 + $0xd0] sm:$0xff] (%p1433_p6)  ;;  %v1093_v0 = vld [vmem:[%s1638_s12 + $0x148] sm:$0xff] (%p1433_p6) }
  0xba   : > { %830 = vst [vmem:[%s1638_s12 + $0x188] sm:$0xff] %v766_v53  ;;  %v1071_v53 = vld [vmem:[%s1638_s12 + $0xf0] sm:$0xff] (%p1433_p6) }
  0xbb   : > { %831 = vst [vmem:[%s1638_s12 + $0x190] sm:$0xff] %v767_v57  ;;  %v1079_v57 = vld [vmem:[%s1638_s12 + $0x110] sm:$0xff] (%p1433_p6)  ;;  %v1097_v2 = vld [vmem:[%s1638_s12 + $0x158] sm:$0xff] (%p1433_p6) }
  0xbc   : > { %832 = vst [vmem:[%s1638_s12 + $0x198] sm:$0xff] %v768_v61  ;;  %v1087_v61 = vld [vmem:[%s1638_s12 + $0x130] sm:$0xff] (%p1433_p6)  ;;  %v1099_v3 = vld [vmem:[%s1638_s12 + $0x160] sm:$0xff] (%p1433_p6) }
  0xbd   : > { %833 = vst [vmem:[%s1638_s12 + $0x1a0] sm:$0xff] %v769_v1  ;;  %v1095_v1 = vld [vmem:[%s1638_s12 + $0x150] sm:$0xff] (%p1433_p6) }
  0xbe   : > { %834 = vst [vmem:[%s1638_s12 + $0x1a8] sm:$0xff] %v770_v4  ;;  %v1101_v4 = vld [vmem:[%s1638_s12 + $0x168] sm:$0xff] (%p1433_p6)  ;;  %v1103_v5 = vld [vmem:[%s1638_s12 + $0x170] sm:$0xff] (%p1433_p6) }
  0xbf   : > { %835 = vst [vmem:[%s1638_s12 + $0x1b0] sm:$0xff] %v771_v8  ;;  %v1105_v7 = vld [vmem:[%s1638_s12 + $0x178] sm:$0xff] (%p1433_p6) }
  0xc0   : > { %836 = vst [vmem:[%s1638_s12 + $0x1b8] sm:$0xff] %v772_v11  ;;  %v1107_v8 = vld [vmem:[%s1638_s12 + $0x180] sm:$0xff] (%p1433_p6) }
  0xc1   : > { %837 = vst [vmem:[%s1638_s12 + $0x1c0] sm:$0xff] %v773_v14  ;;  %v1109_v9 = vld [vmem:[%s1638_s12 + $0x188] sm:$0xff] (%p1433_p6) }
  0xc2   : > { %838 = vst [vmem:[%s1638_s12 + $0x1c8] sm:$0xff] %v774_v16  ;;  %v1111_v10 = vld [vmem:[%s1638_s12 + $0x190] sm:$0xff] (%p1433_p6) }
  0xc3   : > { %839 = vst [vmem:[%s1638_s12 + $0x1d0] sm:$0xff] %v775_v13  ;;  %v1113_v11 = vld [vmem:[%s1638_s12 + $0x198] sm:$0xff] (%p1433_p6) }
  0xc4   : > { %840 = vst [vmem:[%s1638_s12 + $0x1d8] sm:$0xff] %v776_v19  ;;  %851 = sbr.rel (!%p1433_p6) target bundleno = 265 (0x109), region = 74  ;;  %v1115_v12 = vld [vmem:[%s1638_s12 + $0x1a0] sm:$0xff] (%p1433_p6) }
  0xc5   : > { %841 = vst [vmem:[%s1638_s12 + $0x1e0] sm:$0xff] %v777_v20  ;;  %v1117_v14 = vld [vmem:[%s1638_s12 + $0x1a8] sm:$0xff] (%p1433_p6) }
  0xc6   : > { %842 = vst [vmem:[%s1638_s12 + $0x1e8] sm:$0xff] %v778_v21  ;;  %v1119_v15 = vld [vmem:[%s1638_s12 + $0x1b0] sm:$0xff] (%p1433_p6) }
  0xc7   : > { %843 = vst [vmem:[%s1638_s12 + $0x1f0] sm:$0xff] %v779_v22  ;;  %v1121_v16 = vld [vmem:[%s1638_s12 + $0x1b8] sm:$0xff] (%p1433_p6) }
  0xc8   : > { %844 = vst [vmem:[%s1638_s12 + $0x1f8] sm:$0xff] %v780_v23  ;;  %v1123_v17 = vld [vmem:[%s1638_s12 + $0x1c0] sm:$0xff] (%p1433_p6) }
  0xc9   : > { %1012 = vst [vmem:[%s1873_s10] sm:$0xff] %v1011_v31  ;;  %v1125_v13 = vld [vmem:[%s1638_s12 + $0x1c8] sm:$0xff] }
  0xca   : > { %1014 = vst [vmem:[%s1873_s10 + $0x8] sm:$0xff] %v1013_v6  ;;  %v1127_v18 = vld [vmem:[%s1638_s12 + $0x1d0] sm:$0xff] }
  0xcb   : > { %1016 = vst [vmem:[%s1873_s10 + $0x10] sm:$0xff] %v1015_v24  ;;  %v1129_v19 = vld [vmem:[%s1638_s12 + $0x1d8] sm:$0xff] }
  0xcc   : > { %1018 = vst [vmem:[%s1873_s10 + $0x18] sm:$0xff] %v1017_v25  ;;  %v1131_v20 = vld [vmem:[%s1638_s12 + $0x1e0] sm:$0xff] }
  0xcd   : > { %1020 = vst [vmem:[%s1873_s10 + $0x20] sm:$0xff] %v1019_v26  ;;  %v1133_v21 = vld [vmem:[%s1638_s12 + $0x1e8] sm:$0xff] }
  0xce   : > { %1022 = vst [vmem:[%s1873_s10 + $0x28] sm:$0xff] %v1021_v27  ;;  %v1135_v22 = vld [vmem:[%s1638_s12 + $0x1f0] sm:$0xff] }
  0xcf   : > { %1024 = vst [vmem:[%s1873_s10 + $0x30] sm:$0xff] %v1023_v28  ;;  %v1137_v23 = vld [vmem:[%s1638_s12 + $0x1f8] sm:$0xff] }
  0xd0   : > { %1026 = vst [vmem:[%s1873_s10 + $0x38] sm:$0xff] %v1025_v29 }
  0xd1   : > { %1028 = vst [vmem:[%s1873_s10 + $0x40] sm:$0xff] %v1027_v30 }
  0xd2   : > { %1030 = vst [vmem:[%s1873_s10 + $0x48] sm:$0xff] %v1029_v32 }
  0xd3   : > { %1032 = vst [vmem:[%s1873_s10 + $0x50] sm:$0xff] %v1031_v33 }
  0xd4   : > { %1034 = vst [vmem:[%s1873_s10 + $0x58] sm:$0xff] %v1033_v34 }
  0xd5   : > { %1036 = vst [vmem:[%s1873_s10 + $0x60] sm:$0xff] %v1035_v35 }
  0xd6   : > { %1038 = vst [vmem:[%s1873_s10 + $0x68] sm:$0xff] %v1037_v36 }
  0xd7   : > { %1040 = vst [vmem:[%s1873_s10 + $0x70] sm:$0xff] %v1039_v37 }
  0xd8   : > { %1042 = vst [vmem:[%s1873_s10 + $0x78] sm:$0xff] %v1041_v38 }
  0xd9   : > { %1044 = vst [vmem:[%s1873_s10 + $0x100] sm:$0xff] %v1043_v39 }
  0xda   : > { %1046 = vst [vmem:[%s1873_s10 + $0x108] sm:$0xff] %v1045_v40 }
  0xdb   : > { %1048 = vst [vmem:[%s1873_s10 + $0x110] sm:$0xff] %v1047_v41 }
  0xdc   : > { %1050 = vst [vmem:[%s1873_s10 + $0x118] sm:$0xff] %v1049_v42 }
  0xdd   : > { %1052 = vst [vmem:[%s1873_s10 + $0x120] sm:$0xff] %v1051_v43 }
  0xde   : > { %1054 = vst [vmem:[%s1873_s10 + $0x128] sm:$0xff] %v1053_v44 }
  0xdf   : > { %1056 = vst [vmem:[%s1873_s10 + $0x130] sm:$0xff] %v1055_v45 }
  0xe0   : > { %1058 = vst [vmem:[%s1873_s10 + $0x138] sm:$0xff] %v1057_v46 }
  0xe1   : > { %1060 = vst [vmem:[%s1873_s10 + $0x140] sm:$0xff] %v1059_v47 }
  0xe2   : > { %1062 = vst [vmem:[%s1873_s10 + $0x148] sm:$0xff] %v1061_v48 }
  0xe3   : > { %1064 = vst [vmem:[%s1873_s10 + $0x150] sm:$0xff] %v1063_v49 }
  0xe4   : > { %1066 = vst [vmem:[%s1873_s10 + $0x158] sm:$0xff] %v1065_v50 }
  0xe5   : > { %1068 = vst [vmem:[%s1873_s10 + $0x160] sm:$0xff] %v1067_v51 }
  0xe6   : > { %1070 = vst [vmem:[%s1873_s10 + $0x168] sm:$0xff] %v1069_v52 }
  0xe7   : > { %1072 = vst [vmem:[%s1873_s10 + $0x170] sm:$0xff] %v1071_v53 }
  0xe8   : > { %1074 = vst [vmem:[%s1873_s10 + $0x178] sm:$0xff] %v1073_v54 }
  0xe9   : > { %1076 = vst [vmem:[%s1873_s10 + $0x200] sm:$0xff] %v1075_v55 }
  0xea   : > { %1078 = vst [vmem:[%s1873_s10 + $0x208] sm:$0xff] %v1077_v56 }
  0xeb   : > { %1080 = vst [vmem:[%s1873_s10 + $0x210] sm:$0xff] %v1079_v57 }
  0xec   : > { %1082 = vst [vmem:[%s1873_s10 + $0x218] sm:$0xff] %v1081_v58 }
  0xed   : > { %1084 = vst [vmem:[%s1873_s10 + $0x220] sm:$0xff] %v1083_v59 }
  0xee   : > { %1086 = vst [vmem:[%s1873_s10 + $0x228] sm:$0xff] %v1085_v60 }
  0xef   : > { %1088 = vst [vmem:[%s1873_s10 + $0x230] sm:$0xff] %v1087_v61 }
  0xf0   : > { %1090 = vst [vmem:[%s1873_s10 + $0x238] sm:$0xff] %v1089_v62 }
  0xf1   : > { %1092 = vst [vmem:[%s1873_s10 + $0x240] sm:$0xff] %v1091_v63 }
  0xf2   : > { %1094 = vst [vmem:[%s1873_s10 + $0x248] sm:$0xff] %v1093_v0 }
  0xf3   : > { %1096 = vst [vmem:[%s1873_s10 + $0x250] sm:$0xff] %v1095_v1 }
  0xf4   : > { %1098 = vst [vmem:[%s1873_s10 + $0x258] sm:$0xff] %v1097_v2 }
  0xf5   : > { %1100 = vst [vmem:[%s1873_s10 + $0x260] sm:$0xff] %v1099_v3 }
  0xf6   : > { %1102 = vst [vmem:[%s1873_s10 + $0x268] sm:$0xff] %v1101_v4 }
  0xf7   : > { %1104 = vst [vmem:[%s1873_s10 + $0x270] sm:$0xff] %v1103_v5 }
  0xf8   : > { %1106 = vst [vmem:[%s1873_s10 + $0x278] sm:$0xff] %v1105_v7 }
  0xf9   : > { %1108 = vst [vmem:[%s1873_s10 + $0x300] sm:$0xff] %v1107_v8 }
  0xfa   : > { %1110 = vst [vmem:[%s1873_s10 + $0x308] sm:$0xff] %v1109_v9 }
  0xfb   : > { %1112 = vst [vmem:[%s1873_s10 + $0x310] sm:$0xff] %v1111_v10 }
  0xfc   : > { %1114 = vst [vmem:[%s1873_s10 + $0x318] sm:$0xff] %v1113_v11 }
  0xfd   : > { %1116 = vst [vmem:[%s1873_s10 + $0x320] sm:$0xff] %v1115_v12 }
  0xfe   : > { %1118 = vst [vmem:[%s1873_s10 + $0x328] sm:$0xff] %v1117_v14 }
  0xff   : > { %1120 = vst [vmem:[%s1873_s10 + $0x330] sm:$0xff] %v1119_v15 }
 0x100   : > { %1122 = vst [vmem:[%s1873_s10 + $0x338] sm:$0xff] %v1121_v16 }
 0x101   : > { %1124 = vst [vmem:[%s1873_s10 + $0x340] sm:$0xff] %v1123_v17 }
 0x102   : > { %1126 = vst [vmem:[%s1873_s10 + $0x348] sm:$0xff] %v1125_v13 }
 0x103   : > { %1128 = vst [vmem:[%s1873_s10 + $0x350] sm:$0xff] %v1127_v18 }
 0x104   : > { %1130 = vst [vmem:[%s1873_s10 + $0x358] sm:$0xff] %v1129_v19 }
 0x105   : > { %1132 = vst [vmem:[%s1873_s10 + $0x360] sm:$0xff] %v1131_v20 }
 0x106   : > { %1134 = vst [vmem:[%s1873_s10 + $0x368] sm:$0xff] %v1133_v21 }
 0x107   : > { %1136 = vst [vmem:[%s1873_s10 + $0x370] sm:$0xff] %v1135_v22 }
 0x108   : > { %1138 = vst [vmem:[%s1873_s10 + $0x378] sm:$0xff] %v1137_v23 }
 0x109 PF: > { %s13_s18 = sadd.s32 1, %s1363_s18   ;;  %s2027_s12 = smov %s1343_s13 }
 0x10a   : > { %p10_p13 = scmp.ge.s32.totalorder %s13_s18, 6   ;;  %s2028_s13 = smov %s1441_s27 }
 0x10b   : > { %s2029_s14 = smov %s1355_s16  ;;  %s2030_s15 = smov %s1359_s17 }
 0x10c   : > { %s2031_s16 = smov %s2034_s19  ;;  %s2032_s17 = smov %s2038_s20 }
 0x10d   :  { %12 = sbr.rel (!%p10_p13) target bundleno = 4 (0x4), region = 149 }

// kernel: upconv_forward.2
= control target key start
LH: loop header
LB: loop body
LE: loop exit
PB: predicated region body
PF: predicated region fallthrough
CT: control target
= control target key end

     0   :  { %s2600_s15 = smov 0   ;;  %s2602_s16 = smov 0   ;;  %s3313_s0 = inlined_call_operand.vmem [shape: bf16[2,4,256,128], index: 0, kind: input, shape index: {}]   ;;  %s3314_s1 = inlined_call_operand.vmem [shape: bf16[4,128,128], index: 1, kind: input, shape index: {}]   ;;  %s3315_s2 = inlined_call_operand.vmem [shape: f32[2,4,256,128], index: 2, kind: output, shape index: {0}]   ;;  %s3316_s3 = inlined_call_operand.vmem [shape: f32[2,1,128], index: 3, kind: output, shape index: {1}]   ;;  %s3317_s4 = inlined_call_operand.vmem [shape: f32[2,1,128], index: 4, kind: output, shape index: {2}]  }
   0x1   :  { %s2604_s17 = smov 0   ;;  %s2606_s18 = smov 0  }
   0x2   :  { %s2608_s19 = smov 0   ;;  %s2610_s20 = smov 0  }
   0x3   :  { %s2612_s21 = smov 0  }
   0x4 LB: > { %s24_s22 = sadd.s32 1, %s2564_s19  ;;  %s27_s23 = sadd.s32 1, %s2568_s20  ;;  %s2572_s21 = sphi %s2612_s21, %s15_s21   ;;  %s2568_s20 = sphi %s2610_s20, %s3324_s20   ;;  %s2564_s19 = sphi %s2608_s19, %s3323_s19   ;;  %s2560_s18 = sphi %s2606_s18, %s3322_s18   ;;  %s2556_s17 = sphi %s2604_s17, %s3321_s17   ;;  %s2552_s16 = sphi %s2602_s16, %s3320_s16   ;;  %s2548_s15 = sphi %s2600_s15, %s3319_s15  }
   0x5   : > { %p25_p0 = scmp.ge.s32.totalorder %s24_s22, 2  ;;  %s1979_s24 = sadd.s32 4294967295, %s2572_s21  }
   0x6   : > { %p43_p1 = scmp.ne.s32.totalorder %s2552_s16, %s2548_s15  ;;  %p44_p2 = scmp.eq.s32.totalorder %s2572_s21, 0 }
   0x7   : > { %s3326_s22 = smov (%p25_p0, %s24_s22), 0  ;;  %s3328_s23 = smov (!%p25_p0, %s27_s23), %s2568_s20 }
   0x8   : > { %p29_p3 = scmp.ge.s32.totalorder %s3328_s23, 2  ;;  %p96_p4 = scmp.eq.s32.totalorder %s1979_s24, 3 }
   0x9   : > { %s32_s25 = ssub.s32 %s2564_s19, %s3326_s22  ;;  %p45_p5 = por %p44_p2, %p43_p1 }
   0xa   : > { %s3330_s23 = smov (%p29_p3, %s3328_s23), 0  ;;  %p2648_p6 = por %p96_p4, %p43_p1 }
   0xb   : > { %s31_s27 = ssub.s32 %s2568_s20, %s3330_s23  ;;  %s36_s29 = sadd.s32 1, %s2552_s16 }
   0xc   : > { %s33_s28 = sor.u32 %s32_s25, %s31_s27  ;;  %p1982_p8 = scmp.ge.s32.totalorder %s2572_s21, 4 }
   0xd   : > { %p34_p7 = scmp.eq.s32.totalorder %s33_s28, 0 }
   0xe   : > { %173 = sbr.rel (%p1982_p8) target bundleno = 58 (0x3a), region = 20 }
   0xf   : > { %s2656_s30 = scalar_select %p34_p7, %s2552_s16, %s36_s29  }
  0x13   : > { %176 = sbr.rel (!%p45_p5) target bundleno = 58 (0x3a), region = 24  ;;  %s178_s5 = sand.u32 (%p45_p5), 1, %s2552_s16  }
  0x14   : > { %s1984_s6 = sshll.u32 (%p45_p5), %s2564_s19, 4  ;;  %s1983_s7 = sshll.u32 (%p45_p5), %s178_s5, 8 }
  0x15   : > { %s1985_s8 = sshll.u32 (%p45_p5), %s2568_s20, 7  ;;  %s2670_s14 = scalar_lea.vmem (%p45_p5), [#allocation2], %s1983_s7 }
  0x16   : > { %s183_s9 = sadd.s32 (%p45_p5), %s1985_s8, %s1984_s6 }
  0x17   : > { %s1986_s10 = sshll.u32 (%p45_p5), %s183_s9, 2 }
  0x18   : > { %s2665_s13 = scalar_lea.vmem %s3313_s0, %s1986_s10 }
  0x19   : > { %v202_v0 = vld [vmem:[%s2665_s13] sm:$0xff]   ;;  %v206_v1 = vld [vmem:[%s2665_s13 + $0x8] sm:$0xff]   ;;  %v210_v2 = vld [vmem:[%s2665_s13 + $0x10] sm:$0xff]  }
  0x1a   : > { %203 = vst [vmem:[%s2670_s14] sm:$0xff] %v202_v0   ;;  %v214_v3 = vld [vmem:[%s2665_s13 + $0x18] sm:$0xff]   ;;  %v218_v4 = vld [vmem:[%s2665_s13 + $0x20] sm:$0xff]   ;;  %v222_v5 = vld [vmem:[%s2665_s13 + $0x28] sm:$0xff]  }
  0x1b   : > { %207 = vst [vmem:[%s2670_s14 + $0x8] sm:$0xff] %v206_v1   ;;  %v226_v6 = vld [vmem:[%s2665_s13 + $0x30] sm:$0xff]   ;;  %v230_v7 = vld [vmem:[%s2665_s13 + $0x38] sm:$0xff]   ;;  %v234_v8 = vld [vmem:[%s2665_s13 + $0x80] sm:$0xff]  }
  0x1c   : > { %211 = vst [vmem:[%s2670_s14 + $0x10] sm:$0xff] %v210_v2   ;;  %v238_v9 = vld [vmem:[%s2665_s13 + $0x88] sm:$0xff]   ;;  %v242_v10 = vld [vmem:[%s2665_s13 + $0x90] sm:$0xff]   ;;  %v246_v11 = vld [vmem:[%s2665_s13 + $0x98] sm:$0xff]  }
  0x1d   : > { %215 = vst [vmem:[%s2670_s14 + $0x18] sm:$0xff] %v214_v3   ;;  %v250_v12 = vld [vmem:[%s2665_s13 + $0xa0] sm:$0xff]   ;;  %v254_v13 = vld [vmem:[%s2665_s13 + $0xa8] sm:$0xff]   ;;  %v258_v14 = vld [vmem:[%s2665_s13 + $0xb0] sm:$0xff]  }
  0x1e   : > { %219 = vst [vmem:[%s2670_s14 + $0x20] sm:$0xff] %v218_v4   ;;  %v262_v15 = vld [vmem:[%s2665_s13 + $0xb8] sm:$0xff]   ;;  %v266_v16 = vld [vmem:[%s2665_s13 + $0x100] sm:$0xff]   ;;  %v270_v17 = vld [vmem:[%s2665_s13 + $0x108] sm:$0xff]  }
  0x1f   : > { %223 = vst [vmem:[%s2670_s14 + $0x28] sm:$0xff] %v222_v5   ;;  %v274_v18 = vld [vmem:[%s2665_s13 + $0x110] sm:$0xff]   ;;  %v278_v19 = vld [vmem:[%s2665_s13 + $0x118] sm:$0xff]   ;;  %v282_v20 = vld [vmem:[%s2665_s13 + $0x120] sm:$0xff]  }
  0x20   : > { %227 = vst [vmem:[%s2670_s14 + $0x30] sm:$0xff] %v226_v6   ;;  %v286_v21 = vld [vmem:[%s2665_s13 + $0x128] sm:$0xff]   ;;  %v290_v22 = vld [vmem:[%s2665_s13 + $0x130] sm:$0xff]   ;;  %v294_v23 = vld [vmem:[%s2665_s13 + $0x138] sm:$0xff]  }
  0x21   : > { %231 = vst [vmem:[%s2670_s14 + $0x38] sm:$0xff] %v230_v7   ;;  %v298_v24 = vld [vmem:[%s2665_s13 + $0x180] sm:$0xff]   ;;  %v302_v25 = vld [vmem:[%s2665_s13 + $0x188] sm:$0xff]   ;;  %v306_v26 = vld [vmem:[%s2665_s13 + $0x190] sm:$0xff]  }
  0x22   : > { %235 = vst [vmem:[%s2670_s14 + $0x40] sm:$0xff] %v234_v8   ;;  %v310_v27 = vld [vmem:[%s2665_s13 + $0x198] sm:$0xff]   ;;  %v314_v28 = vld [vmem:[%s2665_s13 + $0x1a0] sm:$0xff]   ;;  %v318_v29 = vld [vmem:[%s2665_s13 + $0x1a8] sm:$0xff]  }
  0x23   : > { %239 = vst [vmem:[%s2670_s14 + $0x48] sm:$0xff] %v238_v9   ;;  %v322_v30 = vld [vmem:[%s2665_s13 + $0x1b0] sm:$0xff]   ;;  %v326_v31 = vld [vmem:[%s2665_s13 + $0x1b8] sm:$0xff]  }
  0x24   : > { %243 = vst [vmem:[%s2670_s14 + $0x50] sm:$0xff] %v242_v10  }
  0x25   : > { %247 = vst [vmem:[%s2670_s14 + $0x58] sm:$0xff] %v246_v11  }
  0x26   : > { %251 = vst [vmem:[%s2670_s14 + $0x60] sm:$0xff] %v250_v12  }
  0x27   : > { %255 = vst [vmem:[%s2670_s14 + $0x68] sm:$0xff] %v254_v13  }
  0x28   : > { %259 = vst [vmem:[%s2670_s14 + $0x70] sm:$0xff] %v258_v14  }
  0x29   : > { %263 = vst [vmem:[%s2670_s14 + $0x78] sm:$0xff] %v262_v15  }
  0x2a   : > { %267 = vst [vmem:[%s2670_s14 + $0x80] sm:$0xff] %v266_v16  }
  0x2b   : > { %271 = vst [vmem:[%s2670_s14 + $0x88] sm:$0xff] %v270_v17  }
  0x2c   : > { %275 = vst [vmem:[%s2670_s14 + $0x90] sm:$0xff] %v274_v18  }
  0x2d   : > { %279 = vst [vmem:[%s2670_s14 + $0x98] sm:$0xff] %v278_v19  }
  0x2e   : > { %283 = vst [vmem:[%s2670_s14 + $0xa0] sm:$0xff] %v282_v20  }
  0x2f   : > { %287 = vst [vmem:[%s2670_s14 + $0xa8] sm:$0xff] %v286_v21  }
  0x30   : > { %291 = vst [vmem:[%s2670_s14 + $0xb0] sm:$0xff] %v290_v22  }
  0x31   : > { %295 = vst [vmem:[%s2670_s14 + $0xb8] sm:$0xff] %v294_v23  }
  0x32   : > { %299 = vst [vmem:[%s2670_s14 + $0xc0] sm:$0xff] %v298_v24  }
  0x33   : > { %303 = vst [vmem:[%s2670_s14 + $0xc8] sm:$0xff] %v302_v25  }
  0x34   : > { %307 = vst [vmem:[%s2670_s14 + $0xd0] sm:$0xff] %v306_v26  }
  0x35   : > { %311 = vst [vmem:[%s2670_s14 + $0xd8] sm:$0xff] %v310_v27  }
  0x36   : > { %315 = vst [vmem:[%s2670_s14 + $0xe0] sm:$0xff] %v314_v28  }
  0x37   : > { %319 = vst [vmem:[%s2670_s14 + $0xe8] sm:$0xff] %v318_v29  }
  0x38   : > { %323 = vst [vmem:[%s2670_s14 + $0xf0] sm:$0xff] %v322_v30  }
  0x39   : > { %327 = vst [vmem:[%s2670_s14 + $0xf8] sm:$0xff] %v326_v31  }
  0x3a PF: > { %p1987_p9 = scmp.ge.s32.totalorder %s2572_s21, 1  ;;  %p480_p10 = scmp.lt.s32.totalorder %s2572_s21, 5 }
  0x3c   : > { %p481_p11 = pnand %p1987_p9, %p480_p10 }
  0x3d   : > { %s487_s24 = sand.u32 (!%p481_p11), 1, %s2548_s15   ;;  %p519_p12 = scmp.lt.s32.totalorder (!%p481_p11), %s2560_s18, 1 }
  0x3e   : > { %484 = sbr.rel (%p481_p11) target bundleno = 449 (0x1c1), region = 65  ;;  %s1988_s25 = sshll.u32 (!%p481_p11), %s487_s24, 8 }
  0x3f   : > { %s1989_s27 = sshll.u32 (!%p481_p11), %s487_s24, 9  ;;  %s2748_s10 = scalar_lea.vmem (!%p481_p11), [#allocation2], %s1988_s25 }
  0x40   : > { %s2750_s11 = scalar_lea.vmem (!%p481_p11), [#allocation3], %s1989_s27  ;;  %p1990_p13 = scmp.ne.s32.totalorder (!%p481_p11), %s2556_s17, 0 }
  0x43   : > { %s520_s28 = scalar_select %p519_p12, %s2560_s18, 1 }
  0x44   : > { %528 = sbr.rel (%p1990_p13) target bundleno = 76 (0x4c), region = 73 }
  0x45   : > { %s2741_s6 = scalar_lea.vmem %s3316_s3, %s520_s28  ;;  %s2746_s9 = scalar_lea.vmem %s3317_s4, %s520_s28 }
  0x49   : > { %v2574_v32 = vmov 0.0  }
  0x4a   : > { %529 = vst [vmem:[%s2741_s6] sm:$0x1] %v2574_v32 }
  0x4b   : > { %530 = vst [vmem:[%s2746_s9] sm:$0x1] %v2574_v32 }
  0x4c PF: > { %v2412_v33 = vld [vmem:[%s3314_s1 + $0x38] sm:$0xff]  ;;  %v2411_v37 = vld [vmem:[%s3314_s1 + $0x30] sm:$0xff]  ;;  %v2410_v41 = vld [vmem:[%s3314_s1 + $0x28] sm:$0xff]  ;;  %s2393_s24 = sshll.u32 (%p2648_p6), %s2560_s18, 7 }
  0x4d   : > { %v2428_v34 = vld [vmem:[%s3314_s1 + $0x78] sm:$0xff]  ;;  %659 = vmatpush.bf16.msra.mxu0 %v2412_v33  ;;  %v2427_v38 = vld [vmem:[%s3314_s1 + $0x70] sm:$0xff]  ;;  %v2426_v42 = vld [vmem:[%s3314_s1 + $0x68] sm:$0xff] }
  0x4e   : > { %v2444_v35 = vld [vmem:[%s3314_s1 + $0xb8] sm:$0xff]  ;;  %914 = vmatpush.bf16.msra.mxu1 %v2428_v34  ;;  %v2443_v39 = vld [vmem:[%s3314_s1 + $0xb0] sm:$0xff]  ;;  %v2442_v43 = vld [vmem:[%s3314_s1 + $0xa8] sm:$0xff] }
  0x4f   : > { %v2460_v36 = vld [vmem:[%s3314_s1 + $0xf8] sm:$0xff]  ;;  %1170 = vmatpush.bf16.msra.mxu2 %v2444_v35  ;;  %v2459_v40 = vld [vmem:[%s3314_s1 + $0xf0] sm:$0xff]  ;;  %v2458_v44 = vld [vmem:[%s3314_s1 + $0xe8] sm:$0xff] }
  0x50   : > { %1426 = vmatpush.bf16.msra.mxu3 %v2460_v36  ;;  %v2409_v45 = vld [vmem:[%s3314_s1 + $0x20] sm:$0xff]  ;;  %v2408_v49 = vld [vmem:[%s3314_s1 + $0x18] sm:$0xff]  ;;  %v2407_v53 = vld [vmem:[%s3314_s1 + $0x10] sm:$0xff] }
  0x51   : > { %660 = vmatpush.bf16.msra.mxu0 %v2411_v37  ;;  %v2425_v46 = vld [vmem:[%s3314_s1 + $0x60] sm:$0xff]  ;;  %v2424_v50 = vld [vmem:[%s3314_s1 + $0x58] sm:$0xff]  ;;  %v2423_v54 = vld [vmem:[%s3314_s1 + $0x50] sm:$0xff] }
  0x52   : > { %915 = vmatpush.bf16.msra.mxu1 %v2427_v38  ;;  %v2441_v47 = vld [vmem:[%s3314_s1 + $0xa0] sm:$0xff]  ;;  %v2440_v51 = vld [vmem:[%s3314_s1 + $0x98] sm:$0xff]  ;;  %v2439_v55 = vld [vmem:[%s3314_s1 + $0x90] sm:$0xff] }
  0x53   : > { %1171 = vmatpush.bf16.msra.mxu2 %v2443_v39  ;;  %v2457_v48 = vld [vmem:[%s3314_s1 + $0xe0] sm:$0xff]  ;;  %v2456_v52 = vld [vmem:[%s3314_s1 + $0xd8] sm:$0xff]  ;;  %v2455_v56 = vld [vmem:[%s3314_s1 + $0xd0] sm:$0xff] }
  0x54   : > { %1427 = vmatpush.bf16.msra.mxu3 %v2459_v40  ;;  %v2406_v57 = vld [vmem:[%s3314_s1 + $0x8] sm:$0xff]  ;;  %v2405_v61 = vld [vmem:[%s3314_s1] sm:$0xff]  ;;  %v2399_v9 = vld [vmem:[%s2748_s10 + $0x10] sm:$0xff] }
  0x55   : > { %661 = vmatpush.bf16.msra.mxu0 %v2410_v41  ;;  %v2422_v58 = vld [vmem:[%s3314_s1 + $0x48] sm:$0xff]  ;;  %v2421_v62 = vld [vmem:[%s3314_s1 + $0x40] sm:$0xff]  ;;  %v2415_v10 = vld [vmem:[%s2748_s10 + $0x50] sm:$0xff] }
  0x56   : > { %916 = vmatpush.bf16.msra.mxu1 %v2426_v42  ;;  %v2438_v59 = vld [vmem:[%s3314_s1 + $0x88] sm:$0xff]  ;;  %v2437_v63 = vld [vmem:[%s3314_s1 + $0x80] sm:$0xff]  ;;  %v2431_v11 = vld [vmem:[%s2748_s10 + $0x90] sm:$0xff] }
  0x57   : > { %1172 = vmatpush.bf16.msra.mxu2 %v2442_v43  ;;  %v2454_v60 = vld [vmem:[%s3314_s1 + $0xc8] sm:$0xff]  ;;  %v2453_v0 = vld [vmem:[%s3314_s1 + $0xc0] sm:$0xff]  ;;  %v2447_v12 = vld [vmem:[%s2748_s10 + $0xd0] sm:$0xff] }
  0x58   : > { %1428 = vmatpush.bf16.msra.mxu3 %v2458_v44  ;;  %v2397_v1 = vld [vmem:[%s2748_s10] sm:$0xff]  ;;  %v2398_v5 = vld [vmem:[%s2748_s10 + $0x8] sm:$0xff]  ;;  %v2400_v13 = vld [vmem:[%s2748_s10 + $0x18] sm:$0xff] }
  0x59   : > { %662 = vmatpush.bf16.msra.mxu0 %v2409_v45  ;;  %v2413_v2 = vld [vmem:[%s2748_s10 + $0x40] sm:$0xff]  ;;  %v2414_v6 = vld [vmem:[%s2748_s10 + $0x48] sm:$0xff]  ;;  %v2416_v14 = vld [vmem:[%s2748_s10 + $0x58] sm:$0xff] }
  0x5a   : > { %917 = vmatpush.bf16.msra.mxu1 %v2425_v46  ;;  %v2429_v3 = vld [vmem:[%s2748_s10 + $0x80] sm:$0xff]  ;;  %v2430_v7 = vld [vmem:[%s2748_s10 + $0x88] sm:$0xff]  ;;  %v2432_v15 = vld [vmem:[%s2748_s10 + $0x98] sm:$0xff] }
  0x5b   : > { %1173 = vmatpush.bf16.msra.mxu2 %v2441_v47  ;;  %v2445_v4 = vld [vmem:[%s2748_s10 + $0xc0] sm:$0xff]  ;;  %v2446_v8 = vld [vmem:[%s2748_s10 + $0xc8] sm:$0xff]  ;;  %v2448_v16 = vld [vmem:[%s2748_s10 + $0xd8] sm:$0xff] }
  0x5c   : > { %1429 = vmatpush.bf16.msra.mxu3 %v2457_v48  ;;  %v2401_v17 = vld [vmem:[%s2748_s10 + $0x20] sm:$0xff]  ;;  %v2402_v21 = vld [vmem:[%s2748_s10 + $0x28] sm:$0xff]  ;;  %v2403_v25 = vld [vmem:[%s2748_s10 + $0x30] sm:$0xff] }
  0x5d   : > { %663 = vmatpush.bf16.msra.mxu0 %v2408_v49  ;;  %v2417_v18 = vld [vmem:[%s2748_s10 + $0x60] sm:$0xff]  ;;  %v2418_v22 = vld [vmem:[%s2748_s10 + $0x68] sm:$0xff]  ;;  %v2419_v26 = vld [vmem:[%s2748_s10 + $0x70] sm:$0xff] }
  0x5e   : > { %918 = vmatpush.bf16.msra.mxu1 %v2424_v50  ;;  %v2433_v19 = vld [vmem:[%s2748_s10 + $0xa0] sm:$0xff]  ;;  %v2434_v23 = vld [vmem:[%s2748_s10 + $0xa8] sm:$0xff]  ;;  %v2435_v27 = vld [vmem:[%s2748_s10 + $0xb0] sm:$0xff] }
  0x5f   : > { %1174 = vmatpush.bf16.msra.mxu2 %v2440_v51  ;;  %v2449_v20 = vld [vmem:[%s2748_s10 + $0xe0] sm:$0xff]  ;;  %v2450_v24 = vld [vmem:[%s2748_s10 + $0xe8] sm:$0xff]  ;;  %v2451_v28 = vld [vmem:[%s2748_s10 + $0xf0] sm:$0xff] }
  0x60   : > { %1430 = vmatpush.bf16.msra.mxu3 %v2456_v52  ;;  %v2404_v29 = vld [vmem:[%s2748_s10 + $0x38] sm:$0xff] }
  0x61   : > { %664 = vmatpush.bf16.msra.mxu0 %v2407_v53  ;;  %v2420_v30 = vld [vmem:[%s2748_s10 + $0x78] sm:$0xff] }
  0x62   : > { %919 = vmatpush.bf16.msra.mxu1 %v2423_v54  ;;  %v2436_v31 = vld [vmem:[%s2748_s10 + $0xb8] sm:$0xff] }
  0x63   : > { %1175 = vmatpush.bf16.msra.mxu2 %v2439_v55  ;;  %v2452_v32 = vld [vmem:[%s2748_s10 + $0xf8] sm:$0xff]  ;;  %s2392_s10 = sshll.u32 (%p2648_p6), %s2556_s17, 4 }
  0x64   : > { %1431 = vmatpush.bf16.msra.mxu3 %v2455_v56  ;;  %s1573_s25 = sadd.s32 (%p2648_p6), %s2393_s24, %s2392_s10 }
  0x65   : > { %665 = vmatpush.bf16.msra.mxu0 %v2406_v57 }
  0x66   : > { %920 = vmatpush.bf16.msra.mxu1 %v2422_v58 }
  0x67   : > { %1176 = vmatpush.bf16.msra.mxu2 %v2438_v59 }
  0x68   : > { %1432 = vmatpush.bf16.msra.mxu3 %v2454_v60 }
  0x69   : > { %666 = vmatpush.bf16.msra.mxu0 %v2405_v61 }
  0x6a   : > { %921 = vmatpush.bf16.msra.mxu1 %v2421_v62 }
  0x6b   : > { %1177 = vmatpush.bf16.msra.mxu2 %v2437_v63 }
  0x6c   : > { %1433 = vmatpush.bf16.msra.mxu3 %v2453_v0  ;;  %667 = vmatmul.bf16.vlgmr.msra.gmra.mxu0 %v2397_v1 }
  0x6d   : > { %922 = vmatmul.bf16.vlgmr.msra.gmra.mxu1 %v2413_v2 }
  0x6e   : > { %1178 = vmatmul.bf16.vlgmr.msra.gmra.mxu2 %v2429_v3 }
  0x6f   : > { %1434 = vmatmul.bf16.vlgmr.msra.gmra.mxu3 %v2445_v4 }
  0x7c   : > { %672 = vmatmul.bf16.gmra.mxu0 %v2398_v5 }
  0x7d   : > { %927 = vmatmul.bf16.gmra.mxu1 %v2414_v6 }
  0x7e   : > { %1183 = vmatmul.bf16.gmra.mxu2 %v2430_v7 }
  0x7f   : > { %1439 = vmatmul.bf16.gmra.mxu3 %v2446_v8 }
  0x8c   : > { %677 = vmatmul.bf16.gmra.mxu0 %v2399_v9 }
  0x8d   : > { %932 = vmatmul.bf16.gmra.mxu1 %v2415_v10 }
  0x8e   : > { %1188 = vmatmul.bf16.gmra.mxu2 %v2431_v11 }
  0x8f   : > { %1444 = vmatmul.bf16.gmra.mxu3 %v2447_v12 }
  0x9c   : > { %682 = vmatmul.bf16.gmra.mxu0 %v2400_v13 }
  0x9d   : > { %937 = vmatmul.bf16.gmra.mxu1 %v2416_v14 }
  0x9e   : > { %1193 = vmatmul.bf16.gmra.mxu2 %v2432_v15 }
  0x9f   : > { %1449 = vmatmul.bf16.gmra.mxu3 %v2448_v16 }
  0xac   : > { %687 = vmatmul.bf16.gmra.mxu0 %v2401_v17 }
  0xad   : > { %942 = vmatmul.bf16.gmra.mxu1 %v2417_v18 }
  0xae   : > { %1198 = vmatmul.bf16.gmra.mxu2 %v2433_v19 }
  0xaf   : > { %1454 = vmatmul.bf16.gmra.mxu3 %v2449_v20 }
  0xbc   : > { %692 = vmatmul.bf16.gmra.mxu0 %v2402_v21 }
  0xbd   : > { %947 = vmatmul.bf16.gmra.mxu1 %v2418_v22 }
  0xbe   : > { %1203 = vmatmul.bf16.gmra.mxu2 %v2434_v23 }
  0xbf   : > { %1459 = vmatmul.bf16.gmra.mxu3 %v2450_v24 }
  0xcc   : > { %697 = vmatmul.bf16.gmra.mxu0 %v2403_v25 }
  0xcd   : > { %952 = vmatmul.bf16.gmra.mxu1 %v2419_v26 }
  0xce   : > { %1208 = vmatmul.bf16.gmra.mxu2 %v2435_v27 }
  0xcf   : > { %1464 = vmatmul.bf16.gmra.mxu3 %v2451_v28 }
  0xdc   : > { %702 = vmatmul.bf16.gmra.mxu0 %v2404_v29 }
  0xdd   : > { %957 = vmatmul.bf16.gmra.mxu1 %v2420_v30 }
  0xde   : > { %1213 = vmatmul.bf16.gmra.mxu2 %v2436_v31 }
  0xdf   : > { %1469 = vmatmul.bf16.gmra.mxu3 %v2452_v32 }
  0xe9   : > { %v668_v33 = vpop.f32.mrf.mxu0 }
  0xea   : > { %v923_v34 = vpop.f32.mrf.mxu1  ;;  %708 = vst [vmem:[%s2750_s11] sm:$0xff] %v668_v33  ;;  %v746_v37 = vmul.f32 %v668_v33, %v668_v33 }
  0xeb   : > { %2151 = vst [vmem:[%s2750_s11 + $0x80] sm:$0xff] %v923_v34  ;;  %v1002_v38 = vmul.f32 %v923_v34, %v923_v34 }
  0xf1   : > { %v1179_v35 = vpop.f32.mrf.mxu2  ;;  %v670_v39 = vpop.f32.mrf.mxu0 }
  0xf2   : > { %v1435_v36 = vpop.f32.mrf.mxu3  ;;  %2263 = vst [vmem:[%s2750_s11 + $0x100] sm:$0xff] %v1179_v35  ;;  %v925_v40 = vpop.f32.mrf.mxu1  ;;  %v724_v41 = vadd.f32 %v670_v39, %v668_v33  ;;  %v747_v42 = vmul.f32 %v670_v39, %v670_v39  ;;  %v1258_v47 = vmul.f32 %v1179_v35, %v1179_v35 }
  0xf3   : > { %2375 = vst [vmem:[%s2750_s11 + $0x180] sm:$0xff] %v1435_v36  ;;  %v980_v43 = vadd.f32 %v925_v40, %v923_v34  ;;  %v1003_v44 = vmul.f32 %v925_v40, %v925_v40  ;;  %v1514_v48 = vmul.f32 %v1435_v36, %v1435_v36 }
  0xf4   : > { %709 = vst [vmem:[%s2750_s11 + $0x8] sm:$0xff] %v670_v39  ;;  %v762_v45 = vadd.f32 %v747_v42, %v746_v37 }
  0xf5   : > { %2152 = vst [vmem:[%s2750_s11 + $0x88] sm:$0xff] %v925_v40  ;;  %v1018_v46 = vadd.f32 %v1003_v44, %v1002_v38 }
  0xf9   : > { %v1181_v49 = vpop.f32.mrf.mxu2  ;;  %v673_v55 = vpop.f32.mrf.mxu0 }
  0xfa   : > { %v1437_v50 = vpop.f32.mrf.mxu3  ;;  %2264 = vst [vmem:[%s2750_s11 + $0x108] sm:$0xff] %v1181_v49  ;;  %v1236_v51 = vadd.f32 %v1181_v49, %v1179_v35  ;;  %v1259_v52 = vmul.f32 %v1181_v49, %v1181_v49  ;;  %v928_v56 = vpop.f32.mrf.mxu1  ;;  %v725_v57 = vadd.f32 %v724_v41, %v673_v55  ;;  %v748_v58 = vmul.f32 %v673_v55, %v673_v55 }
  0xfb   : > { %v1492_v53 = vadd.f32 %v1437_v50, %v1435_v36  ;;  %v1515_v54 = vmul.f32 %v1437_v50, %v1437_v50  ;;  %2376 = vst [vmem:[%s2750_s11 + $0x188] sm:$0xff] %v1437_v50  ;;  %v981_v59 = vadd.f32 %v980_v43, %v928_v56  ;;  %v1004_v60 = vmul.f32 %v928_v56, %v928_v56 }
  0xfc   : > { %v1274_v61 = vadd.f32 %v1259_v52, %v1258_v47  ;;  %710 = vst [vmem:[%s2750_s11 + $0x10] sm:$0xff] %v673_v55  ;;  %v763_v63 = vadd.f32 %v762_v45, %v748_v58 }
  0xfd   : > { %v1530_v62 = vadd.f32 %v1515_v54, %v1514_v48  ;;  %2153 = vst [vmem:[%s2750_s11 + $0x90] sm:$0xff] %v928_v56  ;;  %v1019_v0 = vadd.f32 %v1018_v46, %v1004_v60 }
 0x101   : > { %v1184_v1 = vpop.f32.mrf.mxu2  ;;  %v675_v7 = vpop.f32.mrf.mxu0 }
 0x102   : > { %v1440_v2 = vpop.f32.mrf.mxu3  ;;  %2265 = vst [vmem:[%s2750_s11 + $0x110] sm:$0xff] %v1184_v1  ;;  %v1237_v3 = vadd.f32 %v1236_v51, %v1184_v1  ;;  %v1260_v4 = vmul.f32 %v1184_v1, %v1184_v1  ;;  %v930_v8 = vpop.f32.mrf.mxu1  ;;  %v726_v9 = vadd.f32 %v725_v57, %v675_v7  ;;  %v749_v10 = vmul.f32 %v675_v7, %v675_v7 }
 0x103   : > { %v1493_v5 = vadd.f32 %v1492_v53, %v1440_v2  ;;  %v1516_v6 = vmul.f32 %v1440_v2, %v1440_v2  ;;  %2377 = vst [vmem:[%s2750_s11 + $0x190] sm:$0xff] %v1440_v2  ;;  %v982_v11 = vadd.f32 %v981_v59, %v930_v8  ;;  %v1005_v12 = vmul.f32 %v930_v8, %v930_v8 }
 0x104   : > { %v1275_v13 = vadd.f32 %v1274_v61, %v1260_v4  ;;  %711 = vst [vmem:[%s2750_s11 + $0x18] sm:$0xff] %v675_v7  ;;  %v764_v15 = vadd.f32 %v763_v63, %v749_v10 }
 0x105   : > { %v1531_v14 = vadd.f32 %v1530_v62, %v1516_v6  ;;  %2154 = vst [vmem:[%s2750_s11 + $0x98] sm:$0xff] %v930_v8  ;;  %v1020_v16 = vadd.f32 %v1019_v0, %v1005_v12 }
 0x109   : > { %v1186_v17 = vpop.f32.mrf.mxu2  ;;  %v678_v23 = vpop.f32.mrf.mxu0 }
 0x10a   : > { %v1442_v18 = vpop.f32.mrf.mxu3  ;;  %2266 = vst [vmem:[%s2750_s11 + $0x118] sm:$0xff] %v1186_v17  ;;  %v1238_v19 = vadd.f32 %v1237_v3, %v1186_v17  ;;  %v1261_v20 = vmul.f32 %v1186_v17, %v1186_v17  ;;  %v933_v24 = vpop.f32.mrf.mxu1  ;;  %v727_v25 = vadd.f32 %v726_v9, %v678_v23  ;;  %v750_v26 = vmul.f32 %v678_v23, %v678_v23 }
 0x10b   : > { %v1494_v21 = vadd.f32 %v1493_v5, %v1442_v18  ;;  %v1517_v22 = vmul.f32 %v1442_v18, %v1442_v18  ;;  %2378 = vst [vmem:[%s2750_s11 + $0x198] sm:$0xff] %v1442_v18  ;;  %v2899_v27 = vadd.f32 %v982_v11, %v933_v24  ;;  %v1006_v28 = vmul.f32 %v933_v24, %v933_v24 }
 0x10c   : > { %v1276_v29 = vadd.f32 %v1275_v13, %v1261_v20  ;;  %712 = vst [vmem:[%s2750_s11 + $0x20] sm:$0xff] %v678_v23  ;;  %v765_v31 = vadd.f32 %v764_v15, %v750_v26 }
 0x10d   : > { %v1532_v30 = vadd.f32 %v1531_v14, %v1517_v22  ;;  %2155 = vst [vmem:[%s2750_s11 + $0xa0] sm:$0xff] %v933_v24  ;;  %v2903_v32 = vadd.f32 %v1020_v16, %v1006_v28 }
 0x111   : > { %v1189_v33 = vpop.f32.mrf.mxu2  ;;  %v680_v39 = vpop.f32.mrf.mxu0 }
 0x112   : > { %v1445_v34 = vpop.f32.mrf.mxu3  ;;  %2267 = vst [vmem:[%s2750_s11 + $0x120] sm:$0xff] %v1189_v33  ;;  %v2906_v35 = vadd.f32 %v1238_v19, %v1189_v33  ;;  %v1262_v36 = vmul.f32 %v1189_v33, %v1189_v33  ;;  %v935_v40 = vpop.f32.mrf.mxu1  ;;  %v2911_v41 = vadd.f32 %v727_v25, %v680_v39  ;;  %v751_v42 = vmul.f32 %v680_v39, %v680_v39 }
 0x113   : > { %v2908_v37 = vadd.f32 %v1494_v21, %v1445_v34  ;;  %v1518_v38 = vmul.f32 %v1445_v34, %v1445_v34  ;;  %2379 = vst [vmem:[%s2750_s11 + $0x1a0] sm:$0xff] %v1445_v34  ;;  %v1007_v6 = vmul.f32 %v935_v40, %v935_v40  ;;  %v984_v9 = vadd.f32 %v2899_v27, %v935_v40 }
 0x114   : > { %v2913_v43 = vadd.f32 %v1276_v29, %v1262_v36  ;;  %713 = vst [vmem:[%s2750_s11 + $0x28] sm:$0xff] %v680_v39  ;;  %v2918_v45 = vadd.f32 %v765_v31, %v751_v42 }
 0x115   : > { %v2915_v44 = vadd.f32 %v1532_v30, %v1518_v38  ;;  %2156 = vst [vmem:[%s2750_s11 + $0xa8] sm:$0xff] %v935_v40  ;;  %v1022_v14 = vadd.f32 %v2903_v32, %v1007_v6 }
 0x119   : > { %v1191_v46 = vpop.f32.mrf.mxu2  ;;  %v683_v48 = vpop.f32.mrf.mxu0 }
 0x11a   : > { %v1447_v47 = vpop.f32.mrf.mxu3  ;;  %2268 = vst [vmem:[%s2750_s11 + $0x128] sm:$0xff] %v1191_v46  ;;  %v938_v49 = vpop.f32.mrf.mxu1  ;;  %v1263_v7 = vmul.f32 %v1191_v46, %v1191_v46  ;;  %v752_v10 = vmul.f32 %v683_v48, %v683_v48  ;;  %v1240_v15 = vadd.f32 %v2906_v35, %v1191_v46  ;;  %v729_v19 = vadd.f32 %v2911_v41, %v683_v48 }
 0x11b   : > { %2380 = vst [vmem:[%s2750_s11 + $0x1a8] sm:$0xff] %v1447_v47  ;;  %v1519_v8 = vmul.f32 %v1447_v47, %v1447_v47  ;;  %v1008_v11 = vmul.f32 %v938_v49, %v938_v49  ;;  %v1496_v16 = vadd.f32 %v2908_v37, %v1447_v47  ;;  %v985_v20 = vadd.f32 %v984_v9, %v938_v49 }
 0x11c   : > { %714 = vst [vmem:[%s2750_s11 + $0x30] sm:$0xff] %v683_v48  ;;  %v1278_v23 = vadd.f32 %v2913_v43, %v1263_v7  ;;  %v767_v27 = vadd.f32 %v2918_v45, %v752_v10 }
 0x11d   : > { %2157 = vst [vmem:[%s2750_s11 + $0xb0] sm:$0xff] %v938_v49  ;;  %v1534_v24 = vadd.f32 %v2915_v44, %v1519_v8  ;;  %v1023_v28 = vadd.f32 %v1022_v14, %v1008_v11 }
 0x121   : > { %v2925_v50 = vpop.f32.mrf.mxu2  ;;  %v2931_v52 = vpop.f32.mrf.mxu0 }
 0x122   : > { %v2927_v51 = vpop.f32.mrf.mxu3  ;;  %2269 = vst [vmem:[%s2750_s11 + $0x130] sm:$0xff] %v2925_v50  ;;  %v2933_v53 = vpop.f32.mrf.mxu1  ;;  %v1264_v21 = vmul.f32 %v2925_v50, %v2925_v50  ;;  %v753_v25 = vmul.f32 %v2931_v52, %v2931_v52  ;;  %v1241_v29 = vadd.f32 %v1240_v15, %v2925_v50  ;;  %v730_v31 = vadd.f32 %v729_v19, %v2931_v52 }
 0x123   : > { %2381 = vst [vmem:[%s2750_s11 + $0x1b0] sm:$0xff] %v2927_v51  ;;  %v1520_v22 = vmul.f32 %v2927_v51, %v2927_v51  ;;  %v1009_v26 = vmul.f32 %v2933_v53, %v2933_v53  ;;  %v1497_v30 = vadd.f32 %v1496_v16, %v2927_v51  ;;  %v986_v32 = vadd.f32 %v985_v20, %v2933_v53 }
 0x124   : > { %715 = vst [vmem:[%s2750_s11 + $0x38] sm:$0xff] %v2931_v52  ;;  %v1279_v35 = vadd.f32 %v1278_v23, %v1264_v21  ;;  %v768_v39 = vadd.f32 %v767_v27, %v753_v25 }
 0x125   : > { %2158 = vst [vmem:[%s2750_s11 + $0xb8] sm:$0xff] %v2933_v53  ;;  %v1535_v36 = vadd.f32 %v1534_v24, %v1520_v22  ;;  %v1024_v40 = vadd.f32 %v1023_v28, %v1009_v26 }
 0x129   : > { %v2941_v54 = vpop.f32.mrf.mxu2  ;;  %v2947_v56 = vpop.f32.mrf.mxu0 }
 0x12a   : > { %v2943_v55 = vpop.f32.mrf.mxu3  ;;  %2270 = vst [vmem:[%s2750_s11 + $0x138] sm:$0xff] %v2941_v54  ;;  %v2949_v57 = vpop.f32.mrf.mxu1  ;;  %v1265_v33 = vmul.f32 %v2941_v54, %v2941_v54  ;;  %v754_v37 = vmul.f32 %v2947_v56, %v2947_v56  ;;  %v1242_v41 = vadd.f32 %v1241_v29, %v2941_v54  ;;  %v731_v43 = vadd.f32 %v730_v31, %v2947_v56 }
 0x12b   : > { %2382 = vst [vmem:[%s2750_s11 + $0x1b8] sm:$0xff] %v2943_v55  ;;  %v1521_v34 = vmul.f32 %v2943_v55, %v2943_v55  ;;  %v1010_v38 = vmul.f32 %v2949_v57, %v2949_v57  ;;  %v1498_v42 = vadd.f32 %v1497_v30, %v2943_v55  ;;  %v987_v44 = vadd.f32 %v986_v32, %v2949_v57 }
 0x12c   : > { %716 = vst [vmem:[%s2750_s11 + $0x40] sm:$0xff] %v2947_v56  ;;  %v1280_v49 = vadd.f32 %v1279_v35, %v1265_v33  ;;  %v769_v55 = vadd.f32 %v768_v39, %v754_v37 }
 0x12d   : > { %2159 = vst [vmem:[%s2750_s11 + $0xc0] sm:$0xff] %v2949_v57  ;;  %v1536_v50 = vadd.f32 %v1535_v36, %v1521_v34  ;;  %v1025_v56 = vadd.f32 %v1024_v40, %v1010_v38 }
 0x131   : > { %v2957_v58 = vpop.f32.mrf.mxu2  ;;  %v2963_v60 = vpop.f32.mrf.mxu0 }
 0x132   : > { %v2959_v59 = vpop.f32.mrf.mxu3  ;;  %2271 = vst [vmem:[%s2750_s11 + $0x140] sm:$0xff] %v2957_v58  ;;  %v2965_v61 = vpop.f32.mrf.mxu1  ;;  %v1266_v45 = vmul.f32 %v2957_v58, %v2957_v58  ;;  %v755_v51 = vmul.f32 %v2963_v60, %v2963_v60  ;;  %v1243_v57 = vadd.f32 %v1242_v41, %v2957_v58  ;;  %v732_v7 = vadd.f32 %v731_v43, %v2963_v60 }
 0x133   : > { %2383 = vst [vmem:[%s2750_s11 + $0x1c0] sm:$0xff] %v2959_v59  ;;  %v1522_v46 = vmul.f32 %v2959_v59, %v2959_v59  ;;  %v1011_v52 = vmul.f32 %v2965_v61, %v2965_v61  ;;  %v1499_v6 = vadd.f32 %v1498_v42, %v2959_v59  ;;  %v988_v8 = vadd.f32 %v987_v44, %v2965_v61 }
 0x134   : > { %717 = vst [vmem:[%s2750_s11 + $0x48] sm:$0xff] %v2963_v60  ;;  %v1281_v11 = vadd.f32 %v1280_v49, %v1266_v45  ;;  %v770_v60 = vadd.f32 %v769_v55, %v755_v51 }
 0x135   : > { %2160 = vst [vmem:[%s2750_s11 + $0xc8] sm:$0xff] %v2965_v61  ;;  %v1537_v14 = vadd.f32 %v1536_v50, %v1522_v46  ;;  %v1026_v61 = vadd.f32 %v1025_v56, %v1011_v52 }
 0x139   : > { %v2973_v62 = vpop.f32.mrf.mxu2  ;;  %v2979_v0 = vpop.f32.mrf.mxu0 }
 0x13a   : > { %v2975_v63 = vpop.f32.mrf.mxu3  ;;  %2272 = vst [vmem:[%s2750_s11 + $0x148] sm:$0xff] %v2973_v62  ;;  %v2981_v1 = vpop.f32.mrf.mxu1  ;;  %v1267_v9 = vmul.f32 %v2973_v62, %v2973_v62  ;;  %v756_v58 = vmul.f32 %v2979_v0, %v2979_v0  ;;  %v1244_v15 = vadd.f32 %v1243_v57, %v2973_v62  ;;  %v733_v19 = vadd.f32 %v732_v7, %v2979_v0 }
 0x13b   : > { %2384 = vst [vmem:[%s2750_s11 + $0x1c8] sm:$0xff] %v2975_v63  ;;  %v1523_v10 = vmul.f32 %v2975_v63, %v2975_v63  ;;  %v1012_v59 = vmul.f32 %v2981_v1, %v2981_v1  ;;  %v1500_v16 = vadd.f32 %v1499_v6, %v2975_v63  ;;  %v989_v20 = vadd.f32 %v988_v8, %v2981_v1 }
 0x13c   : > { %718 = vst [vmem:[%s2750_s11 + $0x50] sm:$0xff] %v2979_v0  ;;  %v1282_v23 = vadd.f32 %v1281_v11, %v1267_v9  ;;  %v771_v63 = vadd.f32 %v770_v60, %v756_v58 }
 0x13d   : > { %2161 = vst [vmem:[%s2750_s11 + $0xd0] sm:$0xff] %v2981_v1  ;;  %v1538_v24 = vadd.f32 %v1537_v14, %v1523_v10  ;;  %v1027_v26 = vadd.f32 %v1026_v61, %v1012_v59 }
 0x141   : > { %v2989_v2 = vpop.f32.mrf.mxu2  ;;  %v2995_v4 = vpop.f32.mrf.mxu0 }
 0x142   : > { %v2991_v3 = vpop.f32.mrf.mxu3  ;;  %2273 = vst [vmem:[%s2750_s11 + $0x150] sm:$0xff] %v2989_v2  ;;  %v2997_v5 = vpop.f32.mrf.mxu1  ;;  %v1268_v21 = vmul.f32 %v2989_v2, %v2989_v2  ;;  %v757_v25 = vmul.f32 %v2995_v4, %v2995_v4  ;;  %v1245_v0 = vadd.f32 %v1244_v15, %v2989_v2  ;;  %v734_v29 = vadd.f32 %v733_v19, %v2995_v4 }
 0x143   : > { %2385 = vst [vmem:[%s2750_s11 + $0x1d0] sm:$0xff] %v2991_v3  ;;  %v1524_v22 = vmul.f32 %v2991_v3, %v2991_v3  ;;  %v1013_v62 = vmul.f32 %v2997_v5, %v2997_v5  ;;  %v1501_v1 = vadd.f32 %v1500_v16, %v2991_v3  ;;  %v990_v30 = vadd.f32 %v989_v20, %v2997_v5 }
 0x144   : > { %719 = vst [vmem:[%s2750_s11 + $0x58] sm:$0xff] %v2995_v4  ;;  %v1283_v33 = vadd.f32 %v1282_v23, %v1268_v21 }
 0x145   : > { %2162 = vst [vmem:[%s2750_s11 + $0xd8] sm:$0xff] %v2997_v5  ;;  %v1539_v34 = vadd.f32 %v1538_v24, %v1524_v22  ;;  %v772_v5 = vadd.f32 %v771_v63, %v757_v25  ;;  %v1028_v36 = vadd.f32 %v1027_v26, %v1013_v62 }
 0x149   : > { %v3006_v12 = vpop.f32.mrf.mxu2  ;;  %v3015_v17 = vpop.f32.mrf.mxu0 }
 0x14a   : > { %v3008_v13 = vpop.f32.mrf.mxu3  ;;  %2274 = vst [vmem:[%s2750_s11 + $0x158] sm:$0xff] %v3006_v12  ;;  %v3017_v18 = vpop.f32.mrf.mxu1  ;;  %v758_v31 = vmul.f32 %v3015_v17, %v3015_v17  ;;  %v1269_v35 = vmul.f32 %v3006_v12, %v3006_v12  ;;  %v1246_v39 = vadd.f32 %v1245_v0, %v3006_v12  ;;  %v735_v41 = vadd.f32 %v734_v29, %v3015_v17 }
 0x14b   : > { %2386 = vst [vmem:[%s2750_s11 + $0x1d8] sm:$0xff] %v3008_v13  ;;  %v1014_v32 = vmul.f32 %v3017_v18, %v3017_v18  ;;  %v1525_v4 = vmul.f32 %v3008_v13, %v3008_v13  ;;  %v1502_v40 = vadd.f32 %v1501_v1, %v3008_v13  ;;  %v991_v42 = vadd.f32 %v990_v30, %v3017_v18 }
 0x14c   : > { %720 = vst [vmem:[%s2750_s11 + $0x60] sm:$0xff] %v3015_v17  ;;  %v773_v43 = vadd.f32 %v772_v5, %v758_v31  ;;  %v1284_v49 = vadd.f32 %v1283_v33, %v1269_v35 }
 0x14d   : > { %2163 = vst [vmem:[%s2750_s11 + $0xe0] sm:$0xff] %v3017_v18  ;;  %v1029_v44 = vadd.f32 %v1028_v36, %v1014_v32  ;;  %v1540_v50 = vadd.f32 %v1539_v34, %v1525_v4 }
 0x151   : > { %v3057_v47 = vpop.f32.mrf.mxu2  ;;  %v3067_v53 = vpop.f32.mrf.mxu0 }
 0x152   : > { %v3059_v48 = vpop.f32.mrf.mxu3  ;;  %2275 = vst [vmem:[%s2750_s11 + $0x160] sm:$0xff] %v3057_v47  ;;  %v3069_v54 = vpop.f32.mrf.mxu1  ;;  %v759_v37 = vmul.f32 %v3067_v53, %v3067_v53  ;;  %v736_v51 = vadd.f32 %v735_v41, %v3067_v53  ;;  %v1270_v12 = vmul.f32 %v3057_v47, %v3057_v47  ;;  %v1247_v55 = vadd.f32 %v1246_v39, %v3057_v47 }
 0x153   : > { %2387 = vst [vmem:[%s2750_s11 + $0x1e0] sm:$0xff] %v3059_v48  ;;  %v1015_v38 = vmul.f32 %v3069_v54, %v3069_v54  ;;  %v992_v52 = vadd.f32 %v991_v42, %v3069_v54  ;;  %v1526_v13 = vmul.f32 %v3059_v48, %v3059_v48  ;;  %v1503_v56 = vadd.f32 %v1502_v40, %v3059_v48 }
 0x154   : > { %721 = vst [vmem:[%s2750_s11 + $0x68] sm:$0xff] %v3067_v53  ;;  %v774_v17 = vadd.f32 %v773_v43, %v759_v37  ;;  %v1285_v60 = vadd.f32 %v1284_v49, %v1270_v12 }
 0x155   : > { %2164 = vst [vmem:[%s2750_s11 + $0xe8] sm:$0xff] %v3069_v54  ;;  %v1030_v18 = vadd.f32 %v1029_v44, %v1015_v38  ;;  %v1541_v61 = vadd.f32 %v1540_v50, %v1526_v13 }
 0x159   : > { %v3103_v27 = vpop.f32.mrf.mxu2  ;;  %v703_v2 = vpop.f32.mrf.mxu0 }
 0x15a   : > { %v3105_v28 = vpop.f32.mrf.mxu3  ;;  %2276 = vst [vmem:[%s2750_s11 + $0x168] sm:$0xff] %v3103_v27  ;;  %v958_v3 = vpop.f32.mrf.mxu1  ;;  %v760_v45 = vmul.f32 %v703_v2, %v703_v2  ;;  %v737_v57 = vadd.f32 %v736_v51, %v703_v2  ;;  %v1271_v54 = vmul.f32 %v3103_v27, %v3103_v27  ;;  %v1248_v23 = vadd.f32 %v1247_v55, %v3103_v27 }
 0x15b   : > { %2388 = vst [vmem:[%s2750_s11 + $0x1e8] sm:$0xff] %v3105_v28  ;;  %v1016_v46 = vmul.f32 %v958_v3, %v958_v3  ;;  %v993_v6 = vadd.f32 %v992_v52, %v958_v3  ;;  %v1527_v8 = vmul.f32 %v3105_v28, %v3105_v28  ;;  %v1504_v25 = vadd.f32 %v1503_v56, %v3105_v28 }
 0x15c   : > { %722 = vst [vmem:[%s2750_s11 + $0x70] sm:$0xff] %v703_v2  ;;  %v775_v9 = vadd.f32 %v774_v17, %v760_v45  ;;  %v1286_v24 = vadd.f32 %v1285_v60, %v1271_v54 }
 0x15d   : > { %2165 = vst [vmem:[%s2750_s11 + $0xf0] sm:$0xff] %v958_v3  ;;  %v1031_v10 = vadd.f32 %v1030_v18, %v1016_v46  ;;  %v1542_v62 = vadd.f32 %v1541_v61, %v1527_v8 }
 0x161   : > { %v1214_v7 = vpop.f32.mrf.mxu2  ;;  %v705_v11 = vpop.f32.mrf.mxu0 }
 0x162   : > { %v1470_v53 = vpop.f32.mrf.mxu3  ;;  %2277 = vst [vmem:[%s2750_s11 + $0x170] sm:$0xff] %v1214_v7  ;;  %v960_v14 = vpop.f32.mrf.mxu1  ;;  %v738_v47 = vadd.f32 %v737_v57, %v705_v11  ;;  %v761_v48 = vmul.f32 %v705_v11, %v705_v11  ;;  %v1272_v15 = vmul.f32 %v1214_v7, %v1214_v7  ;;  %v1249_v29 = vadd.f32 %v1248_v23, %v1214_v7  ;;  %v1552_v23 = vld [vmem:[%s2741_s6] sm:$0x1] }
 0x163   : > { %2389 = vst [vmem:[%s2750_s11 + $0x1f0] sm:$0xff] %v1470_v53  ;;  %v994_v58 = vadd.f32 %v993_v6, %v960_v14  ;;  %v1017_v59 = vmul.f32 %v960_v14, %v960_v14  ;;  %v1528_v16 = vmul.f32 %v1470_v53, %v1470_v53  ;;  %v1505_v31 = vadd.f32 %v1504_v25, %v1470_v53 }
 0x164   : > { %723 = vst [vmem:[%s2750_s11 + $0x78] sm:$0xff] %v705_v11  ;;  %v739_v19 = vrot.slane %v738_v47, 4  ;;  %v776_v20 = vadd.f32 %v775_v9, %v761_v48  ;;  %v1287_v30 = vadd.f32 %v1286_v24, %v1272_v15 }
 0x165   : > { %2166 = vst [vmem:[%s2750_s11 + $0xf8] sm:$0xff] %v960_v14  ;;  %v995_v21 = vrot.slane %v994_v58, 4  ;;  %v1032_v22 = vadd.f32 %v1031_v10, %v1017_v59  ;;  %v1543_v32 = vadd.f32 %v1542_v62, %v1528_v16 }
 0x166   : > { %v740_v63 = vadd.f32 %v739_v19, %v738_v47  ;;  %v777_v26 = vrot.slane %v776_v20, 4 }
 0x167   : > { %v996_v0 = vadd.f32 %v995_v21, %v994_v58  ;;  %v1033_v1 = vrot.slane %v1032_v22, 4 }
 0x168   : > { %v741_v2 = vrot.slane %v740_v63, 2  ;;  %v778_v3 = vadd.f32 %v777_v26, %v776_v20 }
 0x169   : > { %v997_v33 = vrot.slane %v996_v0, 2  ;;  %v1034_v34 = vadd.f32 %v1033_v1, %v1032_v22  ;;  %v1216_v35 = vpop.f32.mrf.mxu2 }
 0x16a   : > { %v1472_v27 = vpop.f32.mrf.mxu3  ;;  %2278 = vst [vmem:[%s2750_s11 + $0x178] sm:$0xff] %v1216_v35  ;;  %v1250_v4 = vadd.f32 %v1249_v29, %v1216_v35  ;;  %v1273_v28 = vmul.f32 %v1216_v35, %v1216_v35  ;;  %v742_v37 = vadd.f32 %v741_v2, %v740_v63  ;;  %v779_v38 = vrot.slane %v778_v3, 2  ;;  %v1555_v63 = vld [vmem:[%s2746_s9] sm:$0x1] }
 0x16b   : > { %v1506_v5 = vadd.f32 %v1505_v31, %v1472_v27  ;;  %v1529_v36 = vmul.f32 %v1472_v27, %v1472_v27  ;;  %v998_v39 = vadd.f32 %v997_v33, %v996_v0  ;;  %v1035_v40 = vrot.slane %v1034_v34, 2  ;;  %2390 = vst [vmem:[%s2750_s11 + $0x1f8] sm:$0xff] %v1472_v27  ;;  %v1730_v29 = vld [vmem:[%s2750_s11] sm:$0xff] (%p2648_p6)  ;;  %v1734_v31 = vld [vmem:[%s2750_s11 + $0x10] sm:$0xff] (%p2648_p6)  ;;  %v1748_v27 = vld [vmem:[%s2750_s11 + $0x48] sm:$0xff] (%p2648_p6) }
 0x16c   : > { %v1251_v41 = vrot.slane %v1250_v4, 4  ;;  %v1288_v42 = vadd.f32 %v1287_v30, %v1273_v28  ;;  %v743_v45 = vrot.slane %v742_v37, 1  ;;  %v780_v46 = vadd.f32 %v779_v38, %v778_v3  ;;  %v1732_v30 = vld [vmem:[%s2750_s11 + $0x8] sm:$0xff] (%p2648_p6)  ;;  %v1738_v2 = vld [vmem:[%s2750_s11 + $0x20] sm:$0xff] (%p2648_p6)  ;;  %v1742_v33 = vld [vmem:[%s2750_s11 + $0x30] sm:$0xff] (%p2648_p6) }
 0x16d   : > { %v1507_v43 = vrot.slane %v1506_v5, 4  ;;  %v1544_v44 = vadd.f32 %v1543_v32, %v1529_v36  ;;  %v999_v49 = vrot.slane %v998_v39, 1  ;;  %v1036_v50 = vadd.f32 %v1035_v40, %v1034_v34  ;;  %v1736_v32 = vld [vmem:[%s2750_s11 + $0x18] sm:$0xff] (%p2648_p6)  ;;  %v1740_v3 = vld [vmem:[%s2750_s11 + $0x28] sm:$0xff] (%p2648_p6)  ;;  %v1746_v35 = vld [vmem:[%s2750_s11 + $0x40] sm:$0xff] (%p2648_p6) }
 0x16e   : > { %v1252_v51 = vadd.f32 %v1251_v41, %v1250_v4  ;;  %v1289_v52 = vrot.slane %v1288_v42, 4  ;;  %v744_v17 = vadd.f32 %v743_v45, %v742_v37  ;;  %v781_v18 = vrot.slane %v780_v46, 1  ;;  %v1744_v34 = vld [vmem:[%s2750_s11 + $0x38] sm:$0xff] (%p2648_p6)  ;;  %v1750_v4 = vld [vmem:[%s2750_s11 + $0x50] sm:$0xff] (%p2648_p6)  ;;  %v1756_v36 = vld [vmem:[%s2750_s11 + $0x68] sm:$0xff] (%p2648_p6) }
 0x16f   : > { %v1508_v12 = vadd.f32 %v1507_v43, %v1506_v5  ;;  %v1545_v13 = vrot.slane %v1544_v44, 4  ;;  %v1000_v55 = vadd.f32 %v999_v49, %v998_v39  ;;  %v1037_v56 = vrot.slane %v1036_v50, 1  ;;  %v1752_v28 = vld [vmem:[%s2750_s11 + $0x58] sm:$0xff] (%p2648_p6)  ;;  %v1754_v5 = vld [vmem:[%s2750_s11 + $0x60] sm:$0xff] (%p2648_p6)  ;;  %v1758_v37 = vld [vmem:[%s2750_s11 + $0x70] sm:$0xff] (%p2648_p6) }
 0x170   : > { %v1253_v57 = vrot.slane %v1252_v51, 2  ;;  %v1290_v6 = vadd.f32 %v1289_v52, %v1288_v42  ;;  %v782_v54 = vadd.f32 %v781_v18, %v780_v46  ;;  %v1760_v38 = vld [vmem:[%s2750_s11 + $0x78] sm:$0xff] (%p2648_p6)  ;;  %v1762_v39 = vld [vmem:[%s2750_s11 + $0x80] sm:$0xff] (%p2648_p6)  ;;  %v1764_v40 = vld [vmem:[%s2750_s11 + $0x88] sm:$0xff] (%p2648_p6) }
 0x171   : > { %v1509_v7 = vrot.slane %v1508_v12, 2  ;;  %v1546_v53 = vadd.f32 %v1545_v13, %v1544_v44  ;;  %v1001_v8 = vadd.f32 %v1000_v55, %v744_v17  ;;  %v1038_v9 = vadd.f32 %v1037_v56, %v1036_v50  ;;  %v1766_v41 = vld [vmem:[%s2750_s11 + $0x90] sm:$0xff] (%p2648_p6)  ;;  %v1768_v42 = vld [vmem:[%s2750_s11 + $0x98] sm:$0xff] (%p2648_p6)  ;;  %v1770_v43 = vld [vmem:[%s2750_s11 + $0xa0] sm:$0xff] (%p2648_p6) }
 0x172   : > { %v1254_v10 = vadd.f32 %v1253_v57, %v1252_v51  ;;  %v1291_v11 = vrot.slane %v1290_v6, 2  ;;  %v1772_v44 = vld [vmem:[%s2750_s11 + $0xa8] sm:$0xff] (%p2648_p6)  ;;  %v1774_v45 = vld [vmem:[%s2750_s11 + $0xb0] sm:$0xff] (%p2648_p6)  ;;  %v1776_v46 = vld [vmem:[%s2750_s11 + $0xb8] sm:$0xff] (%p2648_p6) }
 0x173   : > { %v1510_v14 = vadd.f32 %v1509_v7, %v1508_v12  ;;  %v1547_v47 = vrot.slane %v1546_v53, 2  ;;  %v1039_v48 = vadd.f32 %v1038_v9, %v782_v54  ;;  %v1778_v49 = vld [vmem:[%s2750_s11 + $0xc0] sm:$0xff] (%p2648_p6)  ;;  %v1780_v50 = vld [vmem:[%s2750_s11 + $0xc8] sm:$0xff] (%p2648_p6)  ;;  %v1782_v51 = vld [vmem:[%s2750_s11 + $0xd0] sm:$0xff] (%p2648_p6) }
 0x174   : > { %v1255_v58 = vrot.slane %v1254_v10, 1  ;;  %v1292_v59 = vadd.f32 %v1291_v11, %v1290_v6  ;;  %v1784_v52 = vld [vmem:[%s2750_s11 + $0xd8] sm:$0xff] (%p2648_p6)  ;;  %v1786_v12 = vld [vmem:[%s2750_s11 + $0xe0] sm:$0xff] (%p2648_p6)  ;;  %v1788_v13 = vld [vmem:[%s2750_s11 + $0xe8] sm:$0xff] (%p2648_p6) }
 0x175   : > { %v1511_v60 = vrot.slane %v1510_v14, 1  ;;  %v1548_v61 = vadd.f32 %v1547_v47, %v1546_v53  ;;  %v1790_v17 = vld [vmem:[%s2750_s11 + $0xf0] sm:$0xff] (%p2648_p6)  ;;  %v1792_v18 = vld [vmem:[%s2750_s11 + $0xf8] sm:$0xff] (%p2648_p6)  ;;  %v1794_v55 = vld [vmem:[%s2750_s11 + $0x100] sm:$0xff] (%p2648_p6) }
 0x176   : > { %v1256_v15 = vadd.f32 %v1255_v58, %v1254_v10  ;;  %v1293_v16 = vrot.slane %v1292_v59, 1  ;;  %v1796_v56 = vld [vmem:[%s2750_s11 + $0x108] sm:$0xff] (%p2648_p6)  ;;  %v1798_v57 = vld [vmem:[%s2750_s11 + $0x110] sm:$0xff] (%p2648_p6)  ;;  %v1800_v6 = vld [vmem:[%s2750_s11 + $0x118] sm:$0xff] (%p2648_p6) }
 0x177   : > { %v1549_v19 = vrot.slane %v1548_v61, 1  ;;  %v1512_v22 = vadd.f32 %v1511_v60, %v1510_v14  ;;  %v1802_v7 = vld [vmem:[%s2750_s11 + $0x120] sm:$0xff] (%p2648_p6)  ;;  %v1804_v53 = vld [vmem:[%s2750_s11 + $0x128] sm:$0xff] (%p2648_p6)  ;;  %v1806_v54 = vld [vmem:[%s2750_s11 + $0x130] sm:$0xff] (%p2648_p6) }
 0x178   : > { %v1257_v20 = vadd.f32 %v1256_v15, %v1001_v8  ;;  %v1294_v21 = vadd.f32 %v1293_v16, %v1292_v59  ;;  %v1808_v8 = vld [vmem:[%s2750_s11 + $0x138] sm:$0xff] (%p2648_p6)  ;;  %v1810_v9 = vld [vmem:[%s2750_s11 + $0x140] sm:$0xff] (%p2648_p6)  ;;  %v1812_v10 = vld [vmem:[%s2750_s11 + $0x148] sm:$0xff] (%p2648_p6) }
 0x179   : > { %v1550_v62 = vadd.f32 %v1549_v19, %v1548_v61  ;;  %v1814_v11 = vld [vmem:[%s2750_s11 + $0x150] sm:$0xff] (%p2648_p6)  ;;  %v1816_v14 = vld [vmem:[%s2750_s11 + $0x158] sm:$0xff] (%p2648_p6)  ;;  %v1818_v47 = vld [vmem:[%s2750_s11 + $0x160] sm:$0xff] (%p2648_p6) }
 0x17a   : > { %v1295_v24 = vadd.f32 %v1294_v21, %v1039_v48  ;;  %v1513_v25 = vadd.f32 %v1512_v22, %v1257_v20  ;;  %v1820_v48 = vld [vmem:[%s2750_s11 + $0x168] sm:$0xff] (%p2648_p6)  ;;  %v1822_v58 = vld [vmem:[%s2750_s11 + $0x170] sm:$0xff] (%p2648_p6)  ;;  %v1824_v59 = vld [vmem:[%s2750_s11 + $0x178] sm:$0xff] (%p2648_p6) }
 0x17b   : > { %v1826_v60 = vld [vmem:[%s2750_s11 + $0x180] sm:$0xff] (%p2648_p6)  ;;  %v1828_v61 = vld [vmem:[%s2750_s11 + $0x188] sm:$0xff] (%p2648_p6)  ;;  %v1830_v15 = vld [vmem:[%s2750_s11 + $0x190] sm:$0xff] (%p2648_p6) }
 0x17c   : > { %v1551_v26 = vadd.f32 %v1550_v62, %v1295_v24  ;;  %v1553_v0 = vadd.f32 %v1552_v23, %v1513_v25  ;;  %1570 = sbr.rel (!%p2648_p6) target bundleno = 449 (0x1c1), region = 77  ;;  %v1832_v16 = vld [vmem:[%s2750_s11 + $0x198] sm:$0xff] (%p2648_p6)  ;;  %v1834_v19 = vld [vmem:[%s2750_s11 + $0x1a0] sm:$0xff] (%p2648_p6)  ;;  %v1836_v20 = vld [vmem:[%s2750_s11 + $0x1a8] sm:$0xff] (%p2648_p6) }
 0x17d   : > { %v1838_v21 = vld [vmem:[%s2750_s11 + $0x1b0] sm:$0xff] (%p2648_p6)  ;;  %v1840_v22 = vld [vmem:[%s2750_s11 + $0x1b8] sm:$0xff] (%p2648_p6)  ;;  %v1842_v23 = vld [vmem:[%s2750_s11 + $0x1c0] sm:$0xff] (%p2648_p6) }
 0x17e   : > { %1554 = vst [vmem:[%s2741_s6] sm:$0x1] %v1553_v0  ;;  %v1556_v1 = vadd.f32 %v1555_v63, %v1551_v26  ;;  %s2394_s6 = sshll.u32 (%p2648_p6), %s1573_s25, 3  ;;  %v1844_v24 = vld [vmem:[%s2750_s11 + $0x1c8] sm:$0xff] (%p2648_p6)  ;;  %v1846_v25 = vld [vmem:[%s2750_s11 + $0x1d0] sm:$0xff] (%p2648_p6)  ;;  %v1848_v62 = vld [vmem:[%s2750_s11 + $0x1d8] sm:$0xff] (%p2648_p6) }
 0x17f   : > { %s3164_s27 = scalar_lea.vmem (%p2648_p6), %s3315_s2, %s2394_s6  ;;  %v1850_v63 = vld [vmem:[%s2750_s11 + $0x1e0] sm:$0xff] (%p2648_p6)  ;;  %v1852_v26 = vld [vmem:[%s2750_s11 + $0x1e8] sm:$0xff] (%p2648_p6)  ;;  %v1854_v0 = vld [vmem:[%s2750_s11 + $0x1f0] sm:$0xff] (%p2648_p6) }
 0x180   : > { %1557 = vst [vmem:[%s2746_s9] sm:$0x1] %v1556_v1  ;;  %v1856_v1 = vld [vmem:[%s2750_s11 + $0x1f8] sm:$0xff] (%p2648_p6) }
 0x181   : > { %1731 = vst [vmem:[%s3164_s27] sm:$0xff] %v1730_v29 }
 0x182   : > { %1733 = vst [vmem:[%s3164_s27 + $0x8] sm:$0xff] %v1732_v30 }
 0x183   : > { %1735 = vst [vmem:[%s3164_s27 + $0x10] sm:$0xff] %v1734_v31 }
 0x184   : > { %1737 = vst [vmem:[%s3164_s27 + $0x18] sm:$0xff] %v1736_v32 }
 0x185   : > { %1739 = vst [vmem:[%s3164_s27 + $0x20] sm:$0xff] %v1738_v2 }
 0x186   : > { %1741 = vst [vmem:[%s3164_s27 + $0x28] sm:$0xff] %v1740_v3 }
 0x187   : > { %1743 = vst [vmem:[%s3164_s27 + $0x30] sm:$0xff] %v1742_v33 }
 0x188   : > { %1745 = vst [vmem:[%s3164_s27 + $0x38] sm:$0xff] %v1744_v34 }
 0x189   : > { %1747 = vst [vmem:[%s3164_s27 + $0x40] sm:$0xff] %v1746_v35 }
 0x18a   : > { %1749 = vst [vmem:[%s3164_s27 + $0x48] sm:$0xff] %v1748_v27 }
 0x18b   : > { %1751 = vst [vmem:[%s3164_s27 + $0x50] sm:$0xff] %v1750_v4 }
 0x18c   : > { %1753 = vst [vmem:[%s3164_s27 + $0x58] sm:$0xff] %v1752_v28 }
 0x18d   : > { %1755 = vst [vmem:[%s3164_s27 + $0x60] sm:$0xff] %v1754_v5 }
 0x18e   : > { %1757 = vst [vmem:[%s3164_s27 + $0x68] sm:$0xff] %v1756_v36 }
 0x18f   : > { %1759 = vst [vmem:[%s3164_s27 + $0x70] sm:$0xff] %v1758_v37 }
 0x190   : > { %1761 = vst [vmem:[%s3164_s27 + $0x78] sm:$0xff] %v1760_v38 }
 0x191   : > { %1763 = vst [vmem:[%s3164_s27 + $0x100] sm:$0xff] %v1762_v39 }
 0x192   : > { %1765 = vst [vmem:[%s3164_s27 + $0x108] sm:$0xff] %v1764_v40 }
 0x193   : > { %1767 = vst [vmem:[%s3164_s27 + $0x110] sm:$0xff] %v1766_v41 }
 0x194   : > { %1769 = vst [vmem:[%s3164_s27 + $0x118] sm:$0xff] %v1768_v42 }
 0x195   : > { %1771 = vst [vmem:[%s3164_s27 + $0x120] sm:$0xff] %v1770_v43 }
 0x196   : > { %1773 = vst [vmem:[%s3164_s27 + $0x128] sm:$0xff] %v1772_v44 }
 0x197   : > { %1775 = vst [vmem:[%s3164_s27 + $0x130] sm:$0xff] %v1774_v45 }
 0x198   : > { %1777 = vst [vmem:[%s3164_s27 + $0x138] sm:$0xff] %v1776_v46 }
 0x199   : > { %1779 = vst [vmem:[%s3164_s27 + $0x140] sm:$0xff] %v1778_v49 }
 0x19a   : > { %1781 = vst [vmem:[%s3164_s27 + $0x148] sm:$0xff] %v1780_v50 }
 0x19b   : > { %1783 = vst [vmem:[%s3164_s27 + $0x150] sm:$0xff] %v1782_v51 }
 0x19c   : > { %1785 = vst [vmem:[%s3164_s27 + $0x158] sm:$0xff] %v1784_v52 }
 0x19d   : > { %1787 = vst [vmem:[%s3164_s27 + $0x160] sm:$0xff] %v1786_v12 }
 0x19e   : > { %1789 = vst [vmem:[%s3164_s27 + $0x168] sm:$0xff] %v1788_v13 }
 0x19f   : > { %1791 = vst [vmem:[%s3164_s27 + $0x170] sm:$0xff] %v1790_v17 }
 0x1a0   : > { %1793 = vst [vmem:[%s3164_s27 + $0x178] sm:$0xff] %v1792_v18 }
 0x1a1   : > { %1795 = vst [vmem:[%s3164_s27 + $0x200] sm:$0xff] %v1794_v55 }
 0x1a2   : > { %1797 = vst [vmem:[%s3164_s27 + $0x208] sm:$0xff] %v1796_v56 }
 0x1a3   : > { %1799 = vst [vmem:[%s3164_s27 + $0x210] sm:$0xff] %v1798_v57 }
 0x1a4   : > { %1801 = vst [vmem:[%s3164_s27 + $0x218] sm:$0xff] %v1800_v6 }
 0x1a5   : > { %1803 = vst [vmem:[%s3164_s27 + $0x220] sm:$0xff] %v1802_v7 }
 0x1a6   : > { %1805 = vst [vmem:[%s3164_s27 + $0x228] sm:$0xff] %v1804_v53 }
 0x1a7   : > { %1807 = vst [vmem:[%s3164_s27 + $0x230] sm:$0xff] %v1806_v54 }
 0x1a8   : > { %1809 = vst [vmem:[%s3164_s27 + $0x238] sm:$0xff] %v1808_v8 }
 0x1a9   : > { %1811 = vst [vmem:[%s3164_s27 + $0x240] sm:$0xff] %v1810_v9 }
 0x1aa   : > { %1813 = vst [vmem:[%s3164_s27 + $0x248] sm:$0xff] %v1812_v10 }
 0x1ab   : > { %1815 = vst [vmem:[%s3164_s27 + $0x250] sm:$0xff] %v1814_v11 }
 0x1ac   : > { %1817 = vst [vmem:[%s3164_s27 + $0x258] sm:$0xff] %v1816_v14 }
 0x1ad   : > { %1819 = vst [vmem:[%s3164_s27 + $0x260] sm:$0xff] %v1818_v47 }
 0x1ae   : > { %1821 = vst [vmem:[%s3164_s27 + $0x268] sm:$0xff] %v1820_v48 }
 0x1af   : > { %1823 = vst [vmem:[%s3164_s27 + $0x270] sm:$0xff] %v1822_v58 }
 0x1b0   : > { %1825 = vst [vmem:[%s3164_s27 + $0x278] sm:$0xff] %v1824_v59 }
 0x1b1   : > { %1827 = vst [vmem:[%s3164_s27 + $0x300] sm:$0xff] %v1826_v60 }
 0x1b2   : > { %1829 = vst [vmem:[%s3164_s27 + $0x308] sm:$0xff] %v1828_v61 }
 0x1b3   : > { %1831 = vst [vmem:[%s3164_s27 + $0x310] sm:$0xff] %v1830_v15 }
 0x1b4   : > { %1833 = vst [vmem:[%s3164_s27 + $0x318] sm:$0xff] %v1832_v16 }
 0x1b5   : > { %1835 = vst [vmem:[%s3164_s27 + $0x320] sm:$0xff] %v1834_v19 }
 0x1b6   : > { %1837 = vst [vmem:[%s3164_s27 + $0x328] sm:$0xff] %v1836_v20 }
 0x1b7   : > { %1839 = vst [vmem:[%s3164_s27 + $0x330] sm:$0xff] %v1838_v21 }
 0x1b8   : > { %1841 = vst [vmem:[%s3164_s27 + $0x338] sm:$0xff] %v1840_v22 }
 0x1b9   : > { %1843 = vst [vmem:[%s3164_s27 + $0x340] sm:$0xff] %v1842_v23 }
 0x1ba   : > { %1845 = vst [vmem:[%s3164_s27 + $0x348] sm:$0xff] %v1844_v24 }
 0x1bb   : > { %1847 = vst [vmem:[%s3164_s27 + $0x350] sm:$0xff] %v1846_v25 }
 0x1bc   : > { %1849 = vst [vmem:[%s3164_s27 + $0x358] sm:$0xff] %v1848_v62 }
 0x1bd   : > { %1851 = vst [vmem:[%s3164_s27 + $0x360] sm:$0xff] %v1850_v63 }
 0x1be   : > { %1853 = vst [vmem:[%s3164_s27 + $0x368] sm:$0xff] %v1852_v26 }
 0x1bf   : > { %1855 = vst [vmem:[%s3164_s27 + $0x370] sm:$0xff] %v1854_v0 }
 0x1c0   : > { %1857 = vst [vmem:[%s3164_s27 + $0x378] sm:$0xff] %v1856_v1 }
 0x1c1 PF: > { %s15_s21 = sadd.s32 1, %s2572_s21   ;;  %s3319_s15 = smov %s2552_s16 }
 0x1c2   : > { %p12_p0 = scmp.ge.s32.totalorder %s15_s21, 6   ;;  %s3320_s16 = smov %s2656_s30 }
 0x1c3   : > { %s3321_s17 = smov %s2564_s19  ;;  %s3322_s18 = smov %s2568_s20 }
 0x1c4   : > { %s3323_s19 = smov %s3326_s22  ;;  %s3324_s20 = smov %s3330_s23 }
 0x1c5   :  { %14 = sbr.rel (!%p12_p0) target bundleno = 4 (0x4), region = 179 }

</bundles_post_ra>
